<compile_context>
chip_gen: v6e
topology: v6e:2x2x1
jax: 0.10.0
libtpu: 0.0.40
codegen_flags: <defaults>
</compile_context>

<pallas_src>
import functools
import math

import jax
import jax.numpy as jnp
from jax import lax
from jax.experimental import pallas as pl
from jax.experimental.pallas import tpu as pltpu

_KH, _KW = 3, 3  # Conv3x3: fixed 3x3 kernel, pad=1, stride=1


def _round_up(x, m):
    return -(-x // m) * m


# ----------------------------------------------------------------------------
# Parameter prep (done once, outside the forward pass)
# ----------------------------------------------------------------------------
def prepare_conv3x3_params(weight, bias):
    """weight: (O, I, 3, 3) PyTorch layout; bias: (O,).

    Returns (w2, b2):
      w2: (9*I, Cout_pad) bf16 -- taps flattened into the contraction dim in
          (di, dj, cin) order so the kernel issues a single big-K MXU dot.
      b2: (1, Cout_pad) f32.
    Cout is padded to 256 when O > 128 (fills the 256-wide MXU on v6e/v7x),
    else to 128, so kernel stores stay lane-dense.
    """
    o, i, kh, kw = weight.shape
    assert (kh, kw) == (_KH, _KW)
    lane = 256 if o > 128 else 128
    cop = _round_up(o, lane)
    w2 = jnp.transpose(weight, (2, 3, 1, 0)).reshape(kh * kw * i, o)
    w2 = jnp.pad(w2, ((0, 0), (0, cop - o))).astype(jnp.bfloat16)
    b2 = jnp.pad(bias, (0, cop - o)).reshape(1, cop).astype(jnp.float32)
    return w2, b2


# ----------------------------------------------------------------------------
# Shared helper: build the (m, 9*Cin) tap matrix and do ONE MXU dot.
# ----------------------------------------------------------------------------
def _fused_tap_dot(taps, w_ref, b_ref, o_ref, th, wo, cin):
    # taps: list of 9 arrays (th, wo, cin) in (di, dj) row-major order.
    lhs = jnp.concatenate(taps, axis=-1).reshape(th * wo, _KH * _KW * cin)
    acc = jnp.dot(lhs, w_ref[...], preferred_element_type=jnp.float32)
    acc = acc + b_ref[...]                       # bias folded at the store
    o_ref[...] = acc.astype(o_ref.dtype)


# ----------------------------------------------------------------------------
# Path A kernel: whole padded image resident in VMEM (small spatial extents).
# ----------------------------------------------------------------------------
def _conv3x3_resident_kernel(x_ref, w_ref, b_ref, o_ref, *, th, wo, cin):
    # x_ref: (Hp, Wp, Cin)  padded input image, bf16 (whole image resident)
    # w_ref: (9*Cin, tn)    fused-tap weights, bf16
    # b_ref: (1, tn)        bias, f32
    # o_ref: (th*Wo, tn)    output rows for this (batch, ci, hi) tile
    hi = pl.program_id(2)
    r0 = pl.multiple_of(hi * th, th)
    taps = []
    for di in range(_KH):
        for dj in range(_KW):
            taps.append(x_ref[pl.ds(r0 + di, th), dj:dj + wo, :])
    _fused_tap_dot(taps, w_ref, b_ref, o_ref, th, wo, cin)


# ----------------------------------------------------------------------------
# Path B kernel: streamed (th+2)-row halo window, manual double-buffered DMA.
# ----------------------------------------------------------------------------
def _conv3x3_halo_kernel(x_hbm, w_ref, b_ref, o_ref, xwin, sem,
                         *, th, wo, cin, hp, n_hi):
    # x_hbm: (N*Hp, Wp, Cin) padded input in HBM (memory_space=pl.ANY), bf16
    # xwin : (2, th+2, Wp, Cin) VMEM double buffer, bf16
    # sem  : DMA semaphores (2,)
    b = pl.program_id(0)
    hi = pl.program_id(1)
    ci = pl.program_id(2)
    n_b = pl.num_programs(0)
    n_ci = pl.num_programs(2)
    g = b * n_hi + hi                 # flat (batch, row-tile) window index
    slot = g % 2

    def window_copy(gg, s):
        row0 = (gg // n_hi) * hp + (gg % n_hi) * th
        return pltpu.make_async_copy(x_hbm.at[pl.ds(row0, th + 2)],
                                     xwin.at[s], sem.at[s])

    # Prime the very first window.
    @pl.when((g == 0) & (ci == 0))
    def _():
        window_copy(0, 0).start()

    # Wait for this window's data (started by the previous step's prefetch).
    @pl.when(ci == 0)
    def _():
        window_copy(g, slot).wait()

    # Prefetch the next (batch, row-tile) window into the other slot while we
    # compute on this one.
    @pl.when((ci == n_ci - 1) & (g + 1 < n_b * n_hi))
    def _():
        window_copy(g + 1, 1 - slot).start()

    win = xwin[slot]                  # (th+2, Wp, Cin) value in VMEM
    taps = []
    for di in range(_KH):
        for dj in range(_KW):
            taps.append(win[di:di + th, dj:dj + wo, :])
    _fused_tap_dot(taps, w_ref, b_ref, o_ref, th, wo, cin)


# ----------------------------------------------------------------------------
# Tiling heuristics
# ----------------------------------------------------------------------------
def _pick_tiles(ho, wo, cop):
    # Cout tile: 256 when possible (fills v6e/v7x MXU), else 128 (v5e-native).
    tn = 256 if cop % 256 == 0 else 128
    # Row tile: m = th*Wo output pixels per step, target <=2048, prefer
    # multiples of 256; th must divide Ho and keep the output block
    # sublane-aligned (or be the full extent).
    divs = [d for d in range(1, ho + 1) if ho % d == 0]
    cands = [d for d in divs if d * wo <= 2048 and (d * wo) % 16 == 0]
    if cands:
        pref = [d for d in cands if (d * wo) % 256 == 0]
        th = max(pref) if pref else max(cands)
    else:
        big = [d for d in divs if (d * wo) % 16 == 0]
        th = min(big) if big else ho  # full-extent block is always legal
    return th, tn


# ----------------------------------------------------------------------------
# Forward
# ----------------------------------------------------------------------------
def conv3x3_nhwc(x_nhwc, w2, b2, *, out_channels, use_refl=True,
                 out_dtype=None, max_resident_bytes=12 << 20):
    """x_nhwc: (N, H, W, Cin) -> (N, H, W, out_channels)."""
    kcin, cop = w2.shape
    cin = kcin // (_KH * _KW)
    n, h, w, cx = x_nhwc.shape
    assert cx == cin, (cx, cin)
    out_dtype = x_nhwc.dtype if out_dtype is None else out_dtype

    mode = "reflect" if use_refl else "constant"
    xp = jnp.pad(x_nhwc, ((0, 0), (1, 1), (1, 1), (0, 0)),
                 mode=mode).astype(jnp.bfloat16)          # pad + cast fuse
    hp, wp = h + 2, w + 2
    ho, wo = h, w                                          # stride 1

    th, tn = _pick_tiles(ho, wo, cop)
    n_hi, n_ci = ho // th, cop // tn

    # Layout-padded footprint of keeping the whole image resident in VMEM
    # (Cin -> 128 lanes, Wp -> x16 sublanes for bf16, x2 pipeline buffers).
    resident_bytes = 2 * hp * _round_up(wp, 16) * _round_up(cin, 128) * 2

    if resident_bytes <= max_resident_bytes:
        # ---- Path A: whole padded image resident in VMEM ----
        out = pl.pallas_call(
            functools.partial(_conv3x3_resident_kernel, th=th, wo=wo, cin=cin),
            out_shape=jax.ShapeDtypeStruct((n, ho * wo, cop), out_dtype),
            grid=(n, n_ci, n_hi),
            in_specs=[
                # Constant index across ci/hi -> DMA'd once per batch element.
                pl.BlockSpec((None, hp, wp, cin), lambda b, ci, hi: (b, 0, 0, 0)),
                pl.BlockSpec((kcin, tn), lambda b, ci, hi: (0, ci)),
                pl.BlockSpec((1, tn), lambda b, ci, hi: (0, ci)),
            ],
            out_specs=pl.BlockSpec((None, th * wo, tn),
                                   lambda b, ci, hi: (b, hi, ci)),
            compiler_params=pltpu.CompilerParams(
                # Megacore sharding pinned to the batch axis only, so two TCs
                # never DMA the same image into their private VMEMs.
                dimension_semantics=("parallel", "arbitrary", "arbitrary")),
        )(xp, w2, b2)
    else:
        # ---- Path B: streamed halo windows, image stays in HBM ----
        xp_flat = xp.reshape(n * hp, wp, cin)
        out = pl.pallas_call(
            functools.partial(_conv3x3_halo_kernel, th=th, wo=wo, cin=cin,
                              hp=hp, n_hi=n_hi),
            out_shape=jax.ShapeDtypeStruct((n, ho * wo, cop), out_dtype),
            grid=(n, n_hi, n_ci),
            in_specs=[
                pl.BlockSpec(memory_space=pl.ANY),
                pl.BlockSpec((kcin, tn), lambda b, hi, ci: (0, ci)),
                pl.BlockSpec((1, tn), lambda b, hi, ci: (0, ci)),
            ],
            out_specs=pl.BlockSpec((None, th * wo, tn),
                                   lambda b, hi, ci: (b, hi, ci)),
            scratch_shapes=[
                pltpu.VMEM((2, th + 2, wp, cin), jnp.bfloat16),
                pltpu.SemaphoreType.DMA((2,)),
            ],
            compiler_params=pltpu.CompilerParams(
                # Cross-step manual prefetch state => keep the grid sequential.
                dimension_semantics=("arbitrary", "arbitrary", "arbitrary")),
        )(xp_flat, w2, b2)

    out = out.reshape(n, ho, wo, cop)
    if out_channels != cop:
        out = out[..., :out_channels]
    return out


def conv3x3(x_nchw, w2, b2, *, out_channels, use_refl=True,
            out_dtype=None, max_resident_bytes=12 << 20):
    """Conv3x3.forward: (N, Cin, H, W) -> (N, Cout, H, W)."""
    x = jnp.transpose(x_nchw, (0, 2, 3, 1))               # NCHW glue only
    out = conv3x3_nhwc(x, w2, b2, out_channels=out_channels,
                       use_refl=use_refl, out_dtype=out_dtype,
                       max_resident_bytes=max_resident_bytes)
    return jnp.transpose(out, (0, 3, 1, 2))


# ----------------------------------------------------------------------------
if __name__ == "__main__":
    key = jax.random.PRNGKey(0)
    kx, kw_, kb, kx2 = jax.random.split(key, 4)

    cin, cout = 4, 8
    scale = 1.0 / math.sqrt(cin * _KH * _KW)
    weight = jax.random.uniform(kw_, (cout, cin, _KH, _KW), jnp.float32,
                                -scale, scale)
    bias = jax.random.uniform(kb, (cout,), jnp.float32, -scale, scale)
    w2, b2 = prepare_conv3x3_params(weight, bias)

    def reference(x):
        xpad = jnp.pad(x, ((0, 0), (0, 0), (1, 1), (1, 1)), mode="reflect")
        r = lax.conv_general_dilated(
            xpad, weight, window_strides=(1, 1), padding="VALID",
            dimension_numbers=("NCHW", "OIHW", "NCHW"))
        return r + bias[None, :, None, None]

    # --- Path A: whole padded image resident in VMEM (small spatial) ---
    x = jax.random.normal(kx, (2, cin, 16, 16), jnp.float32)
    fwd = jax.jit(functools.partial(conv3x3, out_channels=cout, use_refl=True))
    out = jax.block_until_ready(fwd(x, w2, b2))
    assert out.shape == (2, cout, 16, 16), out.shape
    assert bool(jnp.all(jnp.isfinite(out)))
    err = float(jnp.max(jnp.abs(out - reference(x))))
    assert err < 5e-2, f"resident path max abs error {err}"

    # --- Path B: streamed (th+2)-row halo windows (forced for validation) ---
    x2 = jax.random.normal(kx2, (2, cin, 64, 64), jnp.float32)
    fwd_halo = jax.jit(functools.partial(conv3x3, out_channels=cout,
                                         use_refl=True, max_resident_bytes=0))
    out2 = jax.block_until_ready(fwd_halo(x2, w2, b2))
    assert out2.shape == (2, cout, 64, 64), out2.shape
    assert bool(jnp.all(jnp.isfinite(out2)))
    err2 = float(jnp.max(jnp.abs(out2 - reference(x2))))
    assert err2 < 5e-2, f"halo path max abs error {err2}"

    print("KERNEL_OK")
</pallas_src>

<mosaic_0001>
module attributes {stable_mosaic.version = 11 : i64} {
  func.func @_conv3x3_resident_kernel(%arg0: i32, %arg1: i32, %arg2: i32, %arg3: memref<1x18x18x4xbf16, #tpu.memory_space<vmem>>, %arg4: memref<36x128xbf16, #tpu.memory_space<vmem>>, %arg5: memref<1x128xf32, #tpu.memory_space<vmem>>, %arg6: memref<1x256x128xf32, #tpu.memory_space<vmem>>) attributes {dimension_semantics = [#tpu.dimension_semantics<parallel>, #tpu.dimension_semantics<arbitrary>, #tpu.dimension_semantics<arbitrary>], iteration_bounds = array<i64: 2, 1, 1>, scalar_prefetch = 0 : i64, scratch_operands = 0 : i64, tpu.core_type = #tpu.core_type<tc>, window_params = [{transform_indices = @transform_0, window_bounds = array<i64: 1, 18, 18, 4>}, {transform_indices = @transform_1, window_bounds = array<i64: 36, 128>}, {transform_indices = @transform_2, window_bounds = array<i64: 1, 128>}, {transform_indices = @transform_3, window_bounds = array<i64: 1, 256, 128>}]} {
    %c16_i32 = arith.constant 16 : i32
    %0 = arith.muli %arg2, %c16_i32 : i32
    %1 = tpu.assume_multiple %0, 16 : i32
    %c0_i32 = arith.constant 0 : i32
    %2 = arith.addi %1, %c0_i32 : i32
    %c0 = arith.constant 0 : index
    %3 = arith.index_cast %2 : i32 to index
    %c0_0 = arith.constant 0 : index
    %c0_1 = arith.constant 0 : index
    %4 = vector.load %arg3[%c0, %3, %c0_0, %c0_1] : memref<1x18x18x4xbf16, #tpu.memory_space<vmem>>, vector<1x16x16x4xbf16>
    %5 = vector.shape_cast %4 : vector<1x16x16x4xbf16> to vector<16x16x4xbf16>
    %c0_i32_2 = arith.constant 0 : i32
    %6 = arith.addi %1, %c0_i32_2 : i32
    %c0_3 = arith.constant 0 : index
    %7 = arith.index_cast %6 : i32 to index
    %c1 = arith.constant 1 : index
    %c0_4 = arith.constant 0 : index
    %8 = vector.load %arg3[%c0_3, %7, %c1, %c0_4] : memref<1x18x18x4xbf16, #tpu.memory_space<vmem>>, vector<1x16x16x4xbf16>
    %9 = vector.shape_cast %8 : vector<1x16x16x4xbf16> to vector<16x16x4xbf16>
    %c0_i32_5 = arith.constant 0 : i32
    %10 = arith.addi %1, %c0_i32_5 : i32
    %c0_6 = arith.constant 0 : index
    %11 = arith.index_cast %10 : i32 to index
    %c2 = arith.constant 2 : index
    %c0_7 = arith.constant 0 : index
    %12 = vector.load %arg3[%c0_6, %11, %c2, %c0_7] : memref<1x18x18x4xbf16, #tpu.memory_space<vmem>>, vector<1x16x16x4xbf16>
    %13 = vector.shape_cast %12 : vector<1x16x16x4xbf16> to vector<16x16x4xbf16>
    %c1_i32 = arith.constant 1 : i32
    %14 = arith.addi %1, %c1_i32 : i32
    %c0_8 = arith.constant 0 : index
    %15 = arith.index_cast %14 : i32 to index
    %c0_9 = arith.constant 0 : index
    %c0_10 = arith.constant 0 : index
    %16 = vector.load %arg3[%c0_8, %15, %c0_9, %c0_10] : memref<1x18x18x4xbf16, #tpu.memory_space<vmem>>, vector<1x16x16x4xbf16>
    %17 = vector.shape_cast %16 : vector<1x16x16x4xbf16> to vector<16x16x4xbf16>
    %c1_i32_11 = arith.constant 1 : i32
    %18 = arith.addi %1, %c1_i32_11 : i32
    %c0_12 = arith.constant 0 : index
    %19 = arith.index_cast %18 : i32 to index
    %c1_13 = arith.constant 1 : index
    %c0_14 = arith.constant 0 : index
    %20 = vector.load %arg3[%c0_12, %19, %c1_13, %c0_14] : memref<1x18x18x4xbf16, #tpu.memory_space<vmem>>, vector<1x16x16x4xbf16>
    %21 = vector.shape_cast %20 : vector<1x16x16x4xbf16> to vector<16x16x4xbf16>
    %c1_i32_15 = arith.constant 1 : i32
    %22 = arith.addi %1, %c1_i32_15 : i32
    %c0_16 = arith.constant 0 : index
    %23 = arith.index_cast %22 : i32 to index
    %c2_17 = arith.constant 2 : index
    %c0_18 = arith.constant 0 : index
    %24 = vector.load %arg3[%c0_16, %23, %c2_17, %c0_18] : memref<1x18x18x4xbf16, #tpu.memory_space<vmem>>, vector<1x16x16x4xbf16>
    %25 = vector.shape_cast %24 : vector<1x16x16x4xbf16> to vector<16x16x4xbf16>
    %c2_i32 = arith.constant 2 : i32
    %26 = arith.addi %1, %c2_i32 : i32
    %c0_19 = arith.constant 0 : index
    %27 = arith.index_cast %26 : i32 to index
    %c0_20 = arith.constant 0 : index
    %c0_21 = arith.constant 0 : index
    %28 = vector.load %arg3[%c0_19, %27, %c0_20, %c0_21] : memref<1x18x18x4xbf16, #tpu.memory_space<vmem>>, vector<1x16x16x4xbf16>
    %29 = vector.shape_cast %28 : vector<1x16x16x4xbf16> to vector<16x16x4xbf16>
    %c2_i32_22 = arith.constant 2 : i32
    %30 = arith.addi %1, %c2_i32_22 : i32
    %c0_23 = arith.constant 0 : index
    %31 = arith.index_cast %30 : i32 to index
    %c1_24 = arith.constant 1 : index
    %c0_25 = arith.constant 0 : index
    %32 = vector.load %arg3[%c0_23, %31, %c1_24, %c0_25] : memref<1x18x18x4xbf16, #tpu.memory_space<vmem>>, vector<1x16x16x4xbf16>
    %33 = vector.shape_cast %32 : vector<1x16x16x4xbf16> to vector<16x16x4xbf16>
    %c2_i32_26 = arith.constant 2 : i32
    %34 = arith.addi %1, %c2_i32_26 : i32
    %c0_27 = arith.constant 0 : index
    %35 = arith.index_cast %34 : i32 to index
    %c2_28 = arith.constant 2 : index
    %c0_29 = arith.constant 0 : index
    %36 = vector.load %arg3[%c0_27, %35, %c2_28, %c0_29] : memref<1x18x18x4xbf16, #tpu.memory_space<vmem>>, vector<1x16x16x4xbf16>
    %37 = vector.shape_cast %36 : vector<1x16x16x4xbf16> to vector<16x16x4xbf16>
    %38 = tpu.concatenate %5, %9, %13, %17, %21, %25, %29, %33, %37 in 2 : vector<16x16x4xbf16>, vector<16x16x4xbf16>, vector<16x16x4xbf16>, vector<16x16x4xbf16>, vector<16x16x4xbf16>, vector<16x16x4xbf16>, vector<16x16x4xbf16>, vector<16x16x4xbf16>, vector<16x16x4xbf16> -> vector<16x16x36xbf16>
    %39 = vector.shape_cast %38 : vector<16x16x36xbf16> to vector<256x36xbf16>
    %c0_30 = arith.constant 0 : index
    %c0_31 = arith.constant 0 : index
    %40 = vector.load %arg4[%c0_30, %c0_31] : memref<36x128xbf16, #tpu.memory_space<vmem>>, vector<36x128xbf16>
    %cst = arith.constant dense<0.000000e+00> : vector<256x128xf32>
    %41 = tpu.matmul %39, %40, %cst {dimension_numbers = #tpu.dot_dimension_numbers<[1], [0], [0], [1], [0, 0, 1, 1], [], []>} : vector<256x36xbf16>, vector<36x128xbf16>, vector<256x128xf32> -> vector<256x128xf32>
    %c0_32 = arith.constant 0 : index
    %c0_33 = arith.constant 0 : index
    %42 = vector.load %arg5[%c0_32, %c0_33] : memref<1x128xf32, #tpu.memory_space<vmem>>, vector<1x128xf32>
    %43 = vector.broadcast %42 : vector<1x128xf32> to vector<256x128xf32>
    %44 = arith.addf %41, %43 : vector<256x128xf32>
    %c0_34 = arith.constant 0 : index
    %c0_35 = arith.constant 0 : index
    %c0_36 = arith.constant 0 : index
    %45 = vector.load %arg6[%c0_34, %c0_35, %c0_36] : memref<1x256x128xf32, #tpu.memory_space<vmem>>, vector<1x256x128xf32>
    %46 = vector.shape_cast %45 : vector<1x256x128xf32> to vector<256x128xf32>
    %47 = vector.shape_cast %44 : vector<256x128xf32> to vector<1x256x128xf32>
    tpu.vector_store %arg6[%c0_34, %c0_35, %c0_36], %47 {strides = array<i32>} : memref<1x256x128xf32, #tpu.memory_space<vmem>>, vector<1x256x128xf32>,
    return
  }
  func.func @transform_0(%arg0: i32, %arg1: i32, %arg2: i32) -> (i32, i32, i32, i32) {
    %c0_i32 = arith.constant 0 : i32
    %c0_i32_0 = arith.constant 0 : i32
    %c0_i32_1 = arith.constant 0 : i32
    %c0_i32_2 = arith.constant 0 : i32
    return %arg0, %c0_i32, %c0_i32_0, %c0_i32_1 : i32, i32, i32, i32
  }
  func.func @transform_1(%arg0: i32, %arg1: i32, %arg2: i32) -> (i32, i32) {
    %c0_i32 = arith.constant 0 : i32
    %c0_i32_0 = arith.constant 0 : i32
    return %c0_i32, %arg1 : i32, i32
  }
  func.func @transform_2(%arg0: i32, %arg1: i32, %arg2: i32) -> (i32, i32) {
    %c0_i32 = arith.constant 0 : i32
    %c0_i32_0 = arith.constant 0 : i32
    return %c0_i32, %arg1 : i32, i32
  }
  func.func @transform_3(%arg0: i32, %arg1: i32, %arg2: i32) -> (i32, i32, i32) {
    %c0_i32 = arith.constant 0 : i32
    return %arg0, %arg2, %arg1 : i32, i32, i32
  }
}

</mosaic_0001>

<bundles_post_ra>
// kernel: conv3x3.1
= control target key start
LH: loop header
LB: loop body
LE: loop exit
PB: predicated region body
PF: predicated region fallthrough
CT: control target
= control target key end

     0   :  { %s3205_s12 = smov 0   ;;  %s3207_s13 = smov 0   ;;  %s4529_s0 = inlined_call_operand.vmem [shape: bf16[2,18,18,4], index: 0, kind: input, shape index: {}]   ;;  %s4530_s1 = inlined_call_operand.vmem [shape: bf16[36,128], index: 1, kind: input, shape index: {}]   ;;  %s4531_s2 = inlined_call_operand.vmem [shape: f32[1,128], index: 2, kind: input, shape index: {}]   ;;  %s4532_s3 = inlined_call_operand.vmem [shape: f32[2,256,128], index: 3, kind: output, shape index: {}]  }
   0x1   :  { %s3209_s14 = smov 0  }
   0x2 LB: > { %s32_s15 = sadd.s32 1, %s3171_s13  ;;  %p2609_p0 = scmp.ge.s32.totalorder %s3175_s14, 1  ;;  %s3175_s14 = sphi %s3209_s14, %s13_s14   ;;  %s3171_s13 = sphi %s3207_s13, %s4549_s13   ;;  %s3167_s12 = sphi %s3205_s12, %s4548_s12  }
   0x3   : > { %p34_p1 = scmp.ge.s32.totalorder %s32_s15, 2  ;;  %p177_p2 = scmp.lt.s32.totalorder %s3175_s14, 3 }
   0x5   : > { %s4551_s15 = smov (%p34_p1, %s32_s15), 0  ;;  %p178_p3 = pnand %p2609_p0, %p177_p2 }
   0x7   : > { %181 = sbr.rel (%p178_p3) target bundleno = 594 (0x252), region = 32 }
   0xc   : > { %p215_p4 = scmp.lt.s32.totalorder %s3167_s12, 1  ;;  %s3177_s20 = smov 12   ;;  %vm846_vm0 = vcmask 1046528   ;;  %vm573_vm1 = vsmask.f32 7424  ;;  %vm2275_vm2 = vcmask 1041408  }
   0xd   : > { %s3178_s21 = smov 8   ;;  %s3179_s22 = smov 4   ;;  %vm1951_vm3 = vcmask 31744   ;;  %vm1984_vm4 = vcmask 64512   ;;  %vm2017_vm5 = vcmask 97280   ;;  %vm2050_vm6 = vcmask 130048  }
   0xe   : > { %s4553_s12 = smov (!%p215_p4, %s3167_s12), 1  ;;  %s3180_s23 = smov 16   ;;  %vm2083_vm7 = vcmask 162816   ;;  %vm2116_vm8 = vcmask 195584   ;;  %vm2149_vm9 = vcmask 228352   ;;  %vm2182_vm10 = vcmask 261120  }
   0xf   : > { %s2973_s16 = smul.u32 216, %s4553_s12  ;;  %s3181_s24 = smov 20   ;;  %vm2242_vm11 = vcmask 293888  }
  0x10   : > { %s3182_s25 = smov 24   ;;  %s3183_s26 = smov 28  }
  0x11   : > { %s3229_s19 = scalar_lea.vmem %s4529_s0, %s2973_s16  ;;  %s3184_s27 = smov 32  }
  0x12   : > { %v2629_v0 = vld [vmem:[%s3229_s19 + $0x6c] sm:$0xf]  ;;  %v3233_v1 = vld [vmem:[%s3229_s19 + $0x70] sm:$0xf]  ;;  %v262_v6 = vld [vmem:[%s3229_s19 + $0x64] sm:$0xf] }
  0x13   : > { %v3236_v2 = vcombine.low %v2629_v0, %v3233_v1  ;;  %v2613_v3 = vld [vmem:[%s3229_s19 + $0xc] sm:$0xf]  ;;  %v3240_v4 = vld [vmem:[%s3229_s19 + $0x10] sm:$0xf]  ;;  %v301_v7 = vld [vmem:[%s3229_s19 + $0x60] sm:$0xe] }
  0x14   : > { %v3243_v5 = vcombine.low %v2613_v3, %v3240_v4  ;;  %v3250_v8 = vld [vmem:[%s3229_s19 + $0x68] ss:$0 sps:$4 sm:$0x11]   ;;  %v2781_v9 = vcombine.low %v301_v7, %v262_v6  ;;  %v261_v10 = vld [vmem:[%s3229_s19 + $0x60] sm:$0xf]  ;;  %s2907_s7 = sshll.u32 %s4553_s12, 8 }
  0x15   : > { %1023 = vrot.lane.b32.xlu1 %v3236_v2, %s3177_s20  ;;  %v1186_v11 = vshll.u32 %v3236_v2, 16  ;;  %v246_v12 = vld [vmem:[%s3229_s19 + $0x4] sm:$0xf]  ;;  %v872_v14 = vrot.slane %v3250_v8, 1  ;;  %v293_v15 = vld [vmem:[%s3229_s19] sm:$0xe]  ;;  %v3261_v18 = vcombine.low %v261_v10, %v262_v6  ;;  %s4454_s16 = scalar_lea.vmem %s4532_s3, %s2907_s7 }
  0x16   : > { %1007 = vrot.lane.b32.xlu0 %v3243_v5, %s3177_s20  ;;  %v871_v13 = vrot.slane %v2781_v9, 1  ;;  %v245_v16 = vld [vmem:[%s3229_s19] sm:$0xf]  ;;  %v1090_v17 = vshll.u32 %v3243_v5, 16  ;;  %v2773_v20 = vcombine.low %v293_v15, %v246_v12  ;;  %v263_v21 = vld [vmem:[%s3229_s19 + $0x6c] sm:$0xf] }
  0x17   : > { %v3013_v19 = vld [vmem:[%s3229_s19 + $0x8] ss:$0 sps:$4 sm:$0x11]   ;;  %v3266_v23 = vcombine.low %v245_v16, %v246_v12  ;;  %v264_v24 = vld [vmem:[%s3229_s19 + $0x70] sm:$0xf]  ;;  %v671_v30 = vshrl.u32 %v3261_v18, 16 }
  0x18   : > { %v873_v22 = vsel %vm846_vm0, %v871_v13, %v872_v14  ;;  %v302_v25 = vld [vmem:[%s3229_s19 + $0x6c] sm:$0xe]  ;;  %v847_v26 = vrot.slane %v2773_v20, 1  ;;  %v848_v27 = vrot.slane %v3013_v19, 1  ;;  %v3273_v31 = vcombine.low %v263_v21, %v264_v24  ;;  %v248_v33 = vld [vmem:[%s3229_s19 + $0x10] sm:$0xf] }
  0x19   : > { %911 = vrot.lane.b32.xlu1 %v873_v22, %s3178_s21  ;;  %v3017_v28 = vld [vmem:[%s3229_s19 + $0x74] ss:$0 sps:$4 sm:$0x11]   ;;  %v2782_v29 = vcombine.low %v302_v25, %v264_v24  ;;  %v247_v32 = vld [vmem:[%s3229_s19 + $0xc] sm:$0xf]  ;;  %v575_v41 = vshrl.u32 %v3266_v23, 16 }
  0x1a   : > { %v849_v34 = vsel %vm846_vm0, %v847_v26, %v848_v27  ;;  %v875_v36 = vrot.slane %v3017_v28, 1  ;;  %v294_v37 = vld [vmem:[%s3229_s19 + $0xc] sm:$0xe]  ;;  %v3279_v38 = vcombine.low %v247_v32, %v248_v33  ;;  %v3020_v39 = vld [vmem:[%s3229_s19 + $0x14] ss:$0 sps:$4 sm:$0x11]  }
  0x1b   : > { %v874_v35 = vrot.slane %v2782_v29, 1  ;;  %895 = vrot.lane.b32.xlu0 %v849_v34, %s3178_s21  ;;  %v2774_v40 = vcombine.low %v294_v37, %v248_v33  ;;  %v577_v42 = vshll.u32 %v3266_v23, 16  ;;  %v582_v43 = vshll.u32 %v3013_v19, 16  ;;  %v2631_v52 = vld [vmem:[%s3229_s19 + $0x78] sm:$0xf] }
  0x1c   : > { %v587_v45 = vshrl.u32 %v3279_v38, 16  ;;  %v589_v46 = vshll.u32 %v3279_v38, 16  ;;  %v683_v47 = vshrl.u32 %v3273_v31, 16  ;;  %v851_v49 = vrot.slane %v3020_v39, 1  ;;  %v3293_v57 = vld [vmem:[%s3229_s19 + $0x7c] sm:$0xf] }
  0x1d   : > { %v876_v44 = vsel %vm846_vm0, %v874_v35, %v875_v36  ;;  %v850_v48 = vrot.slane %v2774_v40, 1  ;;  %v594_v50 = vshll.u32 %v3020_v39, 16  ;;  %v579_v51 = vrot.slane %v577_v42, 1  ;;  %v2615_v62 = vld [vmem:[%s3229_s19 + $0x18] sm:$0xf] }
  0x1e   : > { %913 = vrot.lane.b32.xlu1 %v876_v44, %s3178_s21  ;;  %v591_v53 = vrot.slane %v589_v46, 1  ;;  %v584_v54 = vrot.slane %v582_v43, 1  ;;  %v685_v55 = vshll.u32 %v3273_v31, 16  ;;  %v690_v56 = vshll.u32 %v3017_v28, 16  ;;  %v3299_v63 = vld [vmem:[%s3229_s19 + $0x1c] sm:$0xf] }
  0x1f   : > { %v852_v58 = vsel %vm846_vm0, %v850_v48, %v851_v49  ;;  %v596_v59 = vrot.slane %v594_v50, 1  ;;  %v580_v60 = vor.u32 %v579_v51, %v575_v41  ;;  %v673_v61 = vshll.u32 %v3261_v18, 16  ;;  %v3306_v13 = vld [vmem:[%s3229_s19 + $0x74] ss:$0 sps:$4 sm:$0x11]  }
  0x20   : > { %897 = vrot.lane.b32.xlu0 %v852_v58, %s3178_s21  ;;  %v592_v0 = vor.u32 %v591_v53, %v587_v45  ;;  %v687_v3 = vrot.slane %v685_v55, 1  ;;  %v692_v6 = vrot.slane %v690_v56, 1  ;;  %v678_v7 = vshll.u32 %v3250_v8, 16  ;;  %v3311_v20 = vld [vmem:[%s3229_s19 + $0x14] ss:$0 sps:$4 sm:$0x11]  }
  0x21   : > { %v585_v9 = vsel %vm573_vm1, %v580_v60, %v584_v54  ;;  %v675_v10 = vrot.slane %v673_v61, 1  ;;  %v2798_v12 = vcombine.low %v2631_v52, %v3293_v57  ;;  %v2790_v19 = vcombine.low %v2615_v62, %v3299_v63  ;;  %v3318_v24 = vld [vmem:[%s3229_s19 + $0x80] ss:$0 sps:$4 sm:$0x11]   ;;  %v2669_v35 = vld [vmem:[%s3229_s19 + $0x6c] sm:$0xe] }
  0x22   : > { %v597_v14 = vsel %vm573_vm1, %v592_v0, %v596_v59  ;;  %v688_v15 = vor.u32 %v687_v3, %v683_v47  ;;  %v680_v16 = vrot.slane %v678_v7, 1  ;;  %v1184_v21 = vshrl.u32 %v3236_v2, 16  ;;  %v2661_v43 = vld [vmem:[%s3229_s19 + $0xc] sm:$0xe]  ;;  %v2670_v45 = vld [vmem:[%s3229_s19 + $0x78] sm:$0xe] }
  0x23   : > { %768 = vrot.lane.b32.xlu1 %v597_v14, %s3179_s22  ;;  %v676_v8 = vor.u32 %v675_v10, %v671_v30  ;;  %v1188_v22 = vrot.slane %v1186_v11, 1  ;;  %v1198_v26 = vshll.u32 %v2798_v12, 16  ;;  %v1191_v27 = vshll.u32 %v3306_v13, 16  ;;  %v3329_v11 = vld [vmem:[%s3229_s19 + $0x20] ss:$0 sps:$4 sm:$0x11]  }
  0x24   : > { %766 = vrot.lane.b32.xlu0 %v585_v9, %s3179_s22  ;;  %v693_v25 = vsel %vm573_vm1, %v688_v15, %v692_v6  ;;  %v1088_v28 = vshrl.u32 %v3243_v5, 16  ;;  %v1102_v30 = vshll.u32 %v2790_v19, 16  ;;  %v1092_v32 = vrot.slane %v1090_v17, 1  ;;  %v2662_v50 = vld [vmem:[%s3229_s19 + $0x18] sm:$0xe] }
  0x25   : > { %v681_v29 = vsel %vm573_vm1, %v676_v8, %v680_v16  ;;  %v1095_v2 = vshll.u32 %v3311_v20, 16  ;;  %v1189_v33 = vor.u32 %v1188_v22, %v1184_v21  ;;  %v1193_v34 = vrot.slane %v1191_v27, 1  ;;  %v2693_v55 = vld [vmem:[%s3229_s19 + $0x78] sm:$0xf]  ;;  %v3349_v56 = vld [vmem:[%s3229_s19 + $0x7c] sm:$0xf] }
  0x26   : > { %v1093_v36 = vor.u32 %v1092_v32, %v1088_v28  ;;  %v1196_v37 = vshrl.u32 %v2798_v12, 16  ;;  %v1200_v39 = vrot.slane %v1198_v26, 1  ;;  %v1203_v5 = vshll.u32 %v3318_v24, 16  ;;  %v2677_v3 = vld [vmem:[%s3229_s19 + $0x18] sm:$0xf] }
  0x27   : > { %784 = vrot.lane.b32.xlu1 %v693_v25, %s3179_s22  ;;  %v1097_v17 = vrot.slane %v1095_v2, 1  ;;  %v1100_v40 = vshrl.u32 %v2790_v19, 16  ;;  %v1104_v41 = vrot.slane %v1102_v30, 1  ;;  %v1107_v42 = vshll.u32 %v3329_v11, 16  ;;  %v3360_v6 = vld [vmem:[%s3229_s19 + $0x1c] sm:$0xf] }
  0x28   : > { %782 = vrot.lane.b32.xlu0 %v681_v29, %s3179_s22  ;;  %v2829_v44 = vcombine.low %v2669_v35, %v3233_v1  ;;  %v1194_v46 = vsel %vm573_vm1, %v1189_v33, %v1193_v34  ;;  %v1201_v47 = vor.u32 %v1200_v39, %v1196_v37  ;;  %v1205_v48 = vrot.slane %v1203_v5, 1  ;;  %v2679_v16 = vld [vmem:[%s3229_s19 + $0x24] sm:$0xf]  ;;  %v3380_v21 = vld [vmem:[%s3229_s19 + $0x80] ss:$0 sps:$4 sm:$0x11]  }
  0x29   : > { %v2821_v49 = vcombine.low %v2661_v43, %v3240_v4  ;;  %v1098_v51 = vsel %vm573_vm1, %v1093_v36, %v1097_v17  ;;  %v1105_v52 = vor.u32 %v1104_v41, %v1100_v40  ;;  %v1109_v53 = vrot.slane %v1107_v42, 1  ;;  %v3387_v27 = vld [vmem:[%s3229_s19 + $0x20] ss:$0 sps:$4 sm:$0x11]   ;;  %v265_v37 = vld [vmem:[%s3229_s19 + $0x78] sm:$0xf] }
  0x2a   : > { %v1383_v1 = vrot.slane %v2829_v44, 1  ;;  %v1384_v54 = vrot.slane %v3306_v13, 1  ;;  %v2830_v58 = vcombine.low %v2670_v45, %v3293_v57  ;;  %v2822_v4 = vcombine.low %v2662_v50, %v3299_v63  ;;  %v2695_v63 = vld [vmem:[%s3229_s19 + $0x84] sm:$0xf]  ;;  %v3369_v13 = vld [vmem:[%s3229_s19 + $0x88] sm:$0xf] }
  0x2b   : > { %1025 = vrot.lane.b32.xlu1 %v2798_v12, %s3177_s20  ;;  %v1206_v59 = vsel %vm573_vm1, %v1201_v47, %v1205_v48  ;;  %v1110_v60 = vsel %vm573_vm1, %v1105_v52, %v1109_v53  ;;  %v1359_v61 = vrot.slane %v2821_v49, 1  ;;  %v1360_v62 = vrot.slane %v3311_v20, 1  ;;  %v3396_v34 = vld [vmem:[%s3229_s19 + $0x2c] ss:$0 sps:$4 sm:$0x11]  }
  0x2c   : > { %1009 = vrot.lane.b32.xlu0 %v2790_v19, %s3177_s20  ;;  %v2845_v0 = vcombine.low %v2693_v55, %v3349_v56  ;;  %v1385_v57 = vsel %vm846_vm0, %v1383_v1, %v1384_v54  ;;  %v1386_v7 = vrot.slane %v2830_v58, 1  ;;  %v1387_v9 = vrot.slane %v3318_v24, 1  ;;  %v3375_v19 = vld [vmem:[%s3229_s19 + $0x28] sm:$0xf]  ;;  %v3401_v39 = vld [vmem:[%s3229_s19 + $0x7c] sm:$0xf] }
  0x2d   : > { %v1362_v10 = vrot.slane %v2822_v4, 1  ;;  %v1363_v12 = vrot.slane %v3329_v11, 1  ;;  %v1361_v14 = vsel %vm846_vm0, %v1359_v61, %v1360_v62  ;;  %v2837_v15 = vcombine.low %v2677_v3, %v3360_v6  ;;  %v3392_v11 = vld [vmem:[%s3229_s19 + $0x8c] ss:$0 sps:$4 sm:$0x11]  }
  0x2e   : > { %v1698_v20 = vshll.u32 %v2845_v0, 16  ;;  %v2846_v8 = vcombine.low %v2695_v63, %v3369_v13  ;;  %v1388_v22 = vsel %vm846_vm0, %v1386_v7, %v1387_v9  ;;  %v2838_v24 = vcombine.low %v2679_v16, %v3375_v19  ;;  %v249_v17 = vld [vmem:[%s3229_s19 + $0x18] sm:$0xf]  ;;  %v3405_v40 = vld [vmem:[%s3229_s19 + $0x1c] sm:$0xf] }
  0x2f   : > { %1295 = vrot.lane.b32.xlu1 %v1194_v46, %s3180_s23  ;;  %v1364_v25 = vsel %vm846_vm0, %v1362_v10, %v1363_v12  ;;  %v1602_v26 = vshll.u32 %v2837_v15, 16  ;;  %v1696_v28 = vshrl.u32 %v2845_v0, 16  ;;  %v1703_v32 = vshll.u32 %v3380_v21, 16  ;;  %v2733_v41 = vld [vmem:[%s3229_s19 + $0x78] sm:$0xe] }
  0x30   : > { %1279 = vrot.lane.b32.xlu0 %v1098_v51, %s3180_s23  ;;  %v1700_v29 = vrot.slane %v1698_v20, 1  ;;  %v1710_v30 = vshll.u32 %v2846_v8, 16  ;;  %v1600_v2 = vshrl.u32 %v2837_v15, 16  ;;  %v1614_v33 = vshll.u32 %v2838_v24, 16  ;;  %v2725_v46 = vld [vmem:[%s3229_s19 + $0x18] sm:$0xe] }
  0x31   : > { %v1604_v35 = vrot.slane %v1602_v26, 1  ;;  %v1607_v36 = vshll.u32 %v3387_v27, 16  ;;  %v1705_v42 = vrot.slane %v1703_v32, 1  ;;  %v1708_v43 = vshrl.u32 %v2846_v8, 16  ;;  %v251_v9 = vld [vmem:[%s3229_s19 + $0x24] sm:$0xf] }
  0x32   : > { %v1701_v5 = vor.u32 %v1700_v29, %v1696_v28  ;;  %v1712_v44 = vrot.slane %v1710_v30, 1  ;;  %v1715_v45 = vshll.u32 %v3392_v11, 16  ;;  %v1612_v47 = vshrl.u32 %v2838_v24, 16  ;;  %v3423_v4 = vld [vmem:[%s3229_s19 + $0x80] ss:$0 sps:$4 sm:$0x11]  }
  0x33   : > { %1297 = vrot.lane.b32.xlu1 %v1206_v59, %s3180_s23  ;;  %v1616_v48 = vrot.slane %v1614_v33, 1  ;;  %v1619_v49 = vshll.u32 %v3396_v34, 16  ;;  %v3414_v50 = vcombine.low %v265_v37, %v3401_v39  ;;  %v1605_v51 = vor.u32 %v1604_v35, %v1600_v2  ;;  %v3440_v10 = vld [vmem:[%s3229_s19 + $0x28] sm:$0xf]  ;;  %v2734_v12 = vld [vmem:[%s3229_s19 + $0x84] sm:$0xe] }
  0x34   : > { %1281 = vrot.lane.b32.xlu0 %v1110_v60, %s3180_s23  ;;  %v1609_v52 = vrot.slane %v1607_v36, 1  ;;  %v3417_v53 = vcombine.low %v249_v17, %v3405_v40  ;;  %v2877_v1 = vcombine.low %v2733_v41, %v3349_v56  ;;  %v2869_v54 = vcombine.low %v2725_v46, %v3360_v6  ;;  %v3429_v56 = vld [vmem:[%s3229_s19 + $0x20] ss:$0 sps:$4 sm:$0x11]   ;;  %v267_v6 = vld [vmem:[%s3229_s19 + $0x84] sm:$0xf] }
  0x35   : > { %v1713_v55 = vor.u32 %v1712_v44, %v1708_v43  ;;  %v1717_v58 = vrot.slane %v1715_v45, 1  ;;  %v1706_v59 = vsel %vm573_vm1, %v1701_v5, %v1705_v42  ;;  %v1617_v60 = vor.u32 %v1616_v48, %v1612_v47  ;;  %v3465_v36 = vld [vmem:[%s3229_s19 + $0x8c] ss:$0 sps:$4 sm:$0x11]  }
  0x36   : > { %v1621_v61 = vrot.slane %v1619_v49, 1  ;;  %v697_v62 = vshll.u32 %v3414_v50, 16  ;;  %v601_v3 = vshll.u32 %v3417_v53, 16  ;;  %v1895_v63 = vrot.slane %v2877_v1, 1 }
  0x37   : > { %1423 = vrot.lane.b32.xlu1 %v1385_v57, %s3181_s24  ;;  %v3435_v57 = vld [vmem:[%s3229_s19 + $0x88] sm:$0xf]  ;;  %v1896_v7 = vrot.slane %v3380_v21, 1  ;;  %v1872_v16 = vrot.slane %v3387_v27, 1  ;;  %v702_v20 = vshll.u32 %v3423_v4, 16  ;;  %v599_v26 = vshrl.u32 %v3417_v53, 16 }
  0x38   : > { %1407 = vrot.lane.b32.xlu0 %v1361_v14, %s3181_s24  ;;  %v1718_v14 = vsel %vm573_vm1, %v1713_v55, %v1717_v58  ;;  %v1622_v21 = vsel %vm573_vm1, %v1617_v60, %v1621_v61  ;;  %v603_v28 = vrot.slane %v601_v3, 1  ;;  %v606_v27 = vshll.u32 %v3429_v56, 16 }
  0x39   : > { %v3457_v29 = vcombine.low %v251_v9, %v3440_v10  ;;  %v2878_v30 = vcombine.low %v2734_v12, %v3369_v13  ;;  %v704_v2 = vrot.slane %v702_v20, 1  ;;  %v1897_v33 = vsel %vm846_vm0, %v1895_v63, %v1896_v7  ;;  %v3470_v13 = vld [vmem:[%s3229_s19 + $0x2c] ss:$0 sps:$4 sm:$0x11]   ;;  %v296_v63 = vld [vmem:[%s3229_s19 + $0x24] sm:$0xe] }
  0x3a   : > { %v604_v17 = vor.u32 %v603_v28, %v599_v26  ;;  %v608_v41 = vrot.slane %v606_v27, 1  ;;  %v1899_v43 = vrot.slane %v3392_v11, 1  ;;  %v1875_v45 = vrot.slane %v3396_v34, 1  ;;  %v295_v34 = vld [vmem:[%s3229_s19 + $0x18] sm:$0xe] }
  0x3b   : > { %1425 = vrot.lane.b32.xlu1 %v1388_v22, %s3181_s24  ;;  %v695_v22 = vshrl.u32 %v3414_v50, 16  ;;  %4538 = vst [vmem:[#allocation2_spill] sm:$0xff] %v3457_v29  ;;  %v1898_v42 = vrot.slane %v2878_v30, 1  ;;  %v714_v49 = vshll.u32 %v3465_v36, 16  ;;  %v611_v1 = vshrl.u32 %v3457_v29, 16 }
  0x3c   : > { %1409 = vrot.lane.b32.xlu0 %v1364_v25, %s3181_s24  ;;  %v3452_v25 = vcombine.low %v267_v6, %v3435_v57  ;;  %v2775_v61 = vcombine.low %v295_v34, %v3405_v40  ;;  %v878_v7 = vrot.slane %v3423_v4, 1  ;;  %v854_v9 = vrot.slane %v3429_v56, 1  ;;  %v2617_v56 = vld [vmem:[%s3229_s19 + $0x24] sm:$0xf]  ;;  %v2635_v28 = vld [vmem:[%s3229_s19 + $0x90] sm:$0xf] }
  0x3d   : > { %v1900_v55 = vsel %vm846_vm0, %v1898_v42, %v1899_v43  ;;  %v2776_v4 = vcombine.low %v296_v63, %v3440_v10  ;;  %v3517_v10 = vld [vmem:[%s3229_s19 + $0x94] sm:$0xf] }
  0x3e   : > { %v709_v37 = vshll.u32 %v3452_v25, 16  ;;  %v707_v47 = vshrl.u32 %v3452_v25, 16 }
  0x3f   : > { %1535 = vrot.lane.b32.xlu1 %v2845_v0, %s3182_s25  ;;  %v1610_v0 = vsel %vm573_vm1, %v1605_v51, %v1609_v52  ;;  %v303_v51 = vld [vmem:[%s3229_s19 + $0x78] sm:$0xe]  ;;  %v609_v52 = vsel %vm573_vm1, %v604_v17, %v608_v41  ;;  %v856_v30 = vrot.slane %v2776_v4, 1  ;;  %v3531_v41 = vld [vmem:[%s3229_s19 + $0x8c] ss:$0 sps:$4 sm:$0x11]  }
  0x40   : > { %1519 = vrot.lane.b32.xlu0 %v2837_v15, %s3182_s25  ;;  %v1871_v15 = vrot.slane %v2869_v54, 1  ;;  %v711_v48 = vrot.slane %v709_v37, 1  ;;  %v618_v54 = vshll.u32 %v3470_v13, 16  ;;  %v2783_v60 = vcombine.low %v303_v51, %v3401_v39  ;;  %v2664_v4 = vld [vmem:[%s3229_s19 + $0x30] sm:$0xe] }
  0x42   : > { %v1873_v5 = vsel %vm846_vm0, %v1871_v15, %v1872_v16  ;;  %v712_v58 = vor.u32 %v711_v48, %v707_v47  ;;  %v620_v6 = vrot.slane %v618_v54, 1  ;;  %v877_v40 = vrot.slane %v2783_v60, 1  ;;  %v2633_v15 = vld [vmem:[%s3229_s19 + $0x84] sm:$0xf]  ;;  %v3501_v16 = vld [vmem:[%s3229_s19 + $0x88] sm:$0xf] }
  0x43   : > { %1537 = vrot.lane.b32.xlu1 %v2846_v8, %s3182_s25  ;;  %v2726_v8 = vld [vmem:[%s3229_s19 + $0x24] sm:$0xe]  ;;  %v1215_v47 = vshll.u32 %v3531_v41, 16 }
  0x44   : > { %1521 = vrot.lane.b32.xlu0 %v2838_v24, %s3182_s25  ;;  %v699_v24 = vrot.slane %v697_v62, 1  ;;  %v2870_v32 = vcombine.low %v2726_v8, %v3375_v19  ;;  %v613_v19 = vshll.u32 %v3457_v29, 16  ;;  %v304_v62 = vld [vmem:[%s3229_s19 + $0x84] sm:$0xe]  ;;  %v3507_v8 = vld [vmem:[%s3229_s19 + $0x28] sm:$0xf] }
  0x45   : > { %v2784_v12 = vcombine.low %v304_v62, %v3435_v57  ;;  %v2791_v26 = vcombine.low %v2617_v56, %v3507_v8  ;;  %v1217_v54 = vrot.slane %v1215_v47, 1  ;;  %v3102_v47 = vld [vmem:[%s4530_s1 + $0x10] ss:$0 sps:$4 sm:$0x33]   ;;  %v257_v29 = vld [vmem:[%s3229_s19 + $0x48] sm:$0xf] }
  0x46   : > { %v700_v35 = vor.u32 %v699_v24, %v695_v22  ;;  %v1874_v44 = vrot.slane %v2870_v32, 1  ;;  %v615_v11 = vrot.slane %v613_v19, 1  ;;  %v2799_v22 = vcombine.low %v2633_v15, %v3501_v16  ;;  %v3535_v19 = vld [vmem:[%s3229_s19 + $0x2c] ss:$0 sps:$4 sm:$0x11]   ;;  %2971 = vmatprep.subr.msk.bf16.mxu0 %vm2275_vm2, %v3102_v47  ;;  %2972 = vmatprep.subr.msk.bf16.mxu1 %vm2275_vm2, %v3102_v47 }
  0x47   : > { %1807 = vrot.lane.b32.xlu1 %v1706_v59, %s3183_s26  ;;  %v716_v59 = vrot.slane %v714_v49, 1  ;;  %v880_v57 = vrot.slane %v2784_v12, 1  ;;  %v879_v24 = vsel %vm846_vm0, %v877_v40, %v878_v7  ;;  %v857_v32 = vrot.slane %v3470_v13, 1  ;;  %v3541_v49 = vld [vmem:[%s3229_s19 + $0x98] ss:$0 sps:$4 sm:$0x11]  }
  0x48   : > { %1791 = vrot.lane.b32.xlu0 %v1610_v0, %s3183_s26  ;;  %v705_v46 = vsel %vm573_vm1, %v700_v35, %v704_v2  ;;  %v1876_v0 = vsel %vm846_vm0, %v1874_v44, %v1875_v45  ;;  %v616_v3 = vor.u32 %v615_v11, %v611_v1  ;;  %v2619_v2 = vld [vmem:[%s3229_s19 + $0x30] sm:$0xf]  ;;  %v1210_v35 = vshll.u32 %v2799_v22, 16 }
  0x49   : > { %v717_v39 = vsel %vm573_vm1, %v712_v58, %v716_v59  ;;  %v858_v13 = vsel %vm846_vm0, %v856_v30, %v857_v32  ;;  %v1208_v43 = vshrl.u32 %v2799_v22, 16  ;;  %v1112_v45 = vshrl.u32 %v2791_v26, 16  ;;  %v2671_v59 = vld [vmem:[%s3229_s19 + $0x84] sm:$0xe]  ;;  %v2681_v30 = vld [vmem:[%s3229_s19 + $0x30] sm:$0xf] }
  0x4a   : > { %v621_v20 = vsel %vm573_vm1, %v616_v3, %v620_v6  ;;  %v1212_v44 = vrot.slane %v1210_v35, 1  ;;  %v1119_v51 = vshll.u32 %v3535_v19, 16  ;;  %v1227_v58 = vshll.u32 %v3541_v49, 16  ;;  %v2663_v3 = vld [vmem:[%s3229_s19 + $0x24] sm:$0xe] }
  0x4b   : > { %1809 = vrot.lane.b32.xlu1 %v1718_v14, %s3183_s26  ;;  %v853_v14 = vrot.slane %v2775_v61, 1  ;;  %v2672_v6 = vld [vmem:[%s3229_s19 + $0x90] sm:$0xe]  ;;  %v2831_v63 = vcombine.low %v2671_v59, %v3501_v16  ;;  %v3576_v32 = vld [vmem:[%s3229_s19 + $0x34] sm:$0xf] }
  0x4c   : > { %1793 = vrot.lane.b32.xlu0 %v1622_v21, %s3183_s26  ;;  %v881_v21 = vrot.slane %v3465_v36, 1  ;;  %v2800_v36 = vcombine.low %v2635_v28, %v3517_v10  ;;  %v1213_v1 = vor.u32 %v1212_v44, %v1208_v43  ;;  %v1121_v60 = vrot.slane %v1119_v51, 1  ;;  %v2699_v35 = vld [vmem:[%s3229_s19 + $0x9c] sm:$0xf] }
  0x4d   : > { %v855_v27 = vsel %vm846_vm0, %v853_v14, %v854_v9  ;;  %v1229_v12 = vrot.slane %v1227_v58, 1  ;;  %v1389_v56 = vrot.slane %v2831_v63, 1  ;;  %v1366_v28 = vrot.slane %v3535_v19, 1  ;;  %v3606_v51 = vld [vmem:[%s3229_s19 + $0x38] ss:$0 sps:$4 sm:$0x11]  }
  0x4e   : > { %v882_v37 = vsel %vm846_vm0, %v880_v57, %v881_v21  ;;  %v1222_v42 = vshll.u32 %v2800_v36, 16  ;;  %v1220_v11 = vshrl.u32 %v2800_v36, 16  ;;  %v1218_v7 = vsel %vm573_vm1, %v1213_v1, %v1217_v54  ;;  %v2697_v57 = vld [vmem:[%s3229_s19 + $0x90] sm:$0xf]  ;;  %v3568_v21 = vld [vmem:[%s3229_s19 + $0x94] sm:$0xf] }
  0x4f   : > { %1935 = vrot.lane.b32.xlu1 %v1897_v33, %s3184_s27  ;;  %v3523_v33 = vld [vmem:[%s3229_s19 + $0x34] sm:$0xf]  ;;  %v2839_v19 = vcombine.low %v2681_v30, %v3576_v32  ;;  %v3609_v1 = vld [vmem:[%s3229_s19 + $0xa4] ss:$0 sps:$4 sm:$0x11]  }
  0x50   : > { %1919 = vrot.lane.b32.xlu0 %v1873_v5, %s3184_s27  ;;  %v1114_v5 = vshll.u32 %v2791_v26, 16  ;;  %v2792_v17 = vcombine.low %v2619_v2, %v3523_v33  ;;  %v2847_v2 = vcombine.low %v2697_v57, %v3568_v21  ;;  %v269_v63 = vld [vmem:[%s3229_s19 + $0x90] sm:$0xf] }
  0x52   : > { %v1116_v48 = vrot.slane %v1114_v5, 1  ;;  %v1124_v61 = vshrl.u32 %v2792_v17, 16  ;;  %v3588_v5 = vld [vmem:[%s3229_s19 + $0x40] sm:$0xf]  ;;  %v1722_v43 = vshll.u32 %v2847_v2, 16 }
  0x53   : > { %786 = vrot.lane.b32.xlu1 %v705_v46, %s3179_s22  ;;  %v1126_v46 = vshll.u32 %v2792_v17, 16 }
  0x54   : > { %770 = vrot.lane.b32.xlu0 %v609_v52, %s3179_s22  ;;  %v3545_v52 = vld [vmem:[%s3229_s19 + $0x38] ss:$0 sps:$4 sm:$0x11]   ;;  %v1117_v34 = vor.u32 %v1116_v48, %v1112_v45  ;;  %v1724_v58 = vrot.slane %v1722_v43, 1 }
  0x55   : > { %v1128_v62 = vrot.slane %v1126_v46, 1  ;;  %v3599_v46 = vld [vmem:[%s3229_s19 + $0x98] ss:$0 sps:$4 sm:$0x11]  }
  0x56   : > { %v1122_v40 = vsel %vm573_vm1, %v1117_v34, %v1121_v60  ;;  %v1720_v34 = vshrl.u32 %v2847_v2, 16  ;;  %v1727_v59 = vshll.u32 %v3599_v46, 16  ;;  %v1624_v60 = vshrl.u32 %v2839_v19, 16 }
  0x57   : > { %1937 = vrot.lane.b32.xlu1 %v1900_v55, %s3184_s27  ;;  %v1224_v55 = vrot.slane %v1222_v42, 1  ;;  %v1129_v14 = vor.u32 %v1128_v62, %v1124_v61  ;;  %v2277_v61 = vsel %vm2275_vm2, %v3102_v47, 0  ;;  %v3112_v62 = vld [vmem:[%s4530_s1] sm:$0xff]  }
  0x58   : > { %1921 = vrot.lane.b32.xlu0 %v1876_v0, %s3184_s27  ;;  %v1131_v0 = vshll.u32 %v3545_v52, 16  ;;  %2928 = vmatpush3.bf16.msra.mxu0 %v2277_v61  ;;  %v3667_v47 = vld [vmem:[%s3229_s19 + $0x40] sm:$0xf] }
  0x59   : > { %v1225_v9 = vor.u32 %v1224_v55, %v1220_v11  ;;  %v3107_v11 = vld [vmem:[%s4530_s1 + $0x8] sm:$0xff]   ;;  %v3616_v55 = vld [vmem:[%s3229_s19 + $0x44] ss:$0 sps:$4 sm:$0x11]   ;;  %2968 = vmatpush3.bf16.msra.mxu1 %v2277_v61 }
  0x5a   : > { %v1133_v15 = vrot.slane %v1131_v0, 1  ;;  %v2735_v0 = vld [vmem:[%s3229_s19 + $0x90] sm:$0xe]  ;;  %2929 = vmatprep.subr.bf16.mxu0 %v3107_v11  ;;  %2966 = vmatprep.subr.bf16.mxu1 %v3107_v11 }
  0x5b   : > { %788 = vrot.lane.b32.xlu1 %v717_v39, %s3179_s22  ;;  %v2823_v39 = vcombine.low %v2663_v3, %v3507_v8  ;;  %v1230_v16 = vsel %vm573_vm1, %v1225_v9, %v1229_v12  ;;  %v1390_v8 = vrot.slane %v3531_v41, 1  ;;  %v1739_v12 = vshll.u32 %v3609_v1, 16 }
  0x5c   : > { %772 = vrot.lane.b32.xlu0 %v621_v20, %s3179_s22  ;;  %v2832_v20 = vcombine.low %v2672_v6, %v3517_v10  ;;  %v1631_v6 = vshll.u32 %v3606_v51, 16  ;;  %2930 = vmatpush3.bf16.msra.mxu0 %v3107_v11 }
  0x5d   : > { %2969 = vmatpush3.bf16.msra.mxu1 %v3107_v11  ;;  %2931 = vmatprep.subr.bf16.mxu0 %v3112_v62 }
  0x5e   : > { %v1392_v10 = vrot.slane %v2832_v20, 1  ;;  %2967 = vmatprep.subr.bf16.mxu1 %v3112_v62 }
  0x5f   : > { %915 = vrot.lane.b32.xlu1 %v879_v24, %s3178_s21  ;;  %v1134_v24 = vsel %vm573_vm1, %v1129_v14, %v1133_v15 }
  0x60   : > { %899 = vrot.lane.b32.xlu0 %v855_v27, %s3178_s21  ;;  %v1393_v27 = vrot.slane %v3541_v49, 1  ;;  %v1626_v49 = vshll.u32 %v2839_v19, 16  ;;  %2932 = vmatpush3.bf16.msra.mxu0 %v3112_v62 }
  0x61   : > { %2970 = vmatpush3.bf16.msra.mxu1 %v3112_v62 }
  0x62   : > { %v1394_v45 = vsel %vm846_vm0, %v1392_v10, %v1393_v27  ;;  %v1628_v3 = vrot.slane %v1626_v49, 1  ;;  %v1741_v10 = vrot.slane %v1739_v12, 1  ;;  %v3694_v12 = vld [vmem:[%s3229_s19 + $0xa4] ss:$0 sps:$4 sm:$0x11]  }
  0x63   : > { %917 = vrot.lane.b32.xlu1 %v882_v37, %s3178_s21  ;;  %v2683_v37 = vld [vmem:[%s3229_s19 + $0x3c] sm:$0xf] }
  0x64   : > { %901 = vrot.lane.b32.xlu0 %v858_v13, %s3178_s21  ;;  %v1369_v13 = vrot.slane %v3545_v52, 1  ;;  %v2840_v44 = vcombine.low %v2683_v37, %v3588_v5 }
  0x66   : > { %v1638_v54 = vshll.u32 %v2840_v44, 16  ;;  %v1636_v15 = vshrl.u32 %v2840_v44, 16 }
  0x67   : > { %1027 = vrot.lane.b32.xlu1 %v2799_v22, %s3177_s20  ;;  %v2824_v22 = vcombine.low %v2664_v4, %v3523_v33  ;;  %v1391_v33 = vsel %vm846_vm0, %v1389_v56, %v1390_v8  ;;  %v1643_v4 = vshll.u32 %v3616_v55, 16  ;;  %v1725_v56 = vor.u32 %v1724_v58, %v1720_v34  ;;  %v2728_v58 = vld [vmem:[%s3229_s19 + $0x3c] sm:$0xe] }
  0x68   : > { %1011 = vrot.lane.b32.xlu0 %v2791_v26, %s3177_s20  ;;  %v1365_v26 = vrot.slane %v2823_v39, 1  ;;  %v253_v39 = vld [vmem:[%s3229_s19 + $0x30] sm:$0xf]  ;;  %v1640_v20 = vrot.slane %v1638_v54, 1  ;;  %v1729_v8 = vrot.slane %v1727_v59, 1  ;;  %v1878_v34 = vrot.slane %v3606_v51, 1 }
  0x69   : > { %v1368_v41 = vrot.slane %v2824_v22, 1  ;;  %v1629_v22 = vor.u32 %v1628_v3, %v1624_v60 }
  0x6b   : > { %1029 = vrot.lane.b32.xlu1 %v2800_v36, %s3177_s20  ;;  %v3582_v36 = vld [vmem:[%s3229_s19 + $0xa0] sm:$0xf]  ;;  %v1370_v48 = vsel %vm846_vm0, %v1368_v41, %v1369_v13 }
  0x6c   : > { %1013 = vrot.lane.b32.xlu0 %v2792_v17, %s3177_s20  ;;  %v1367_v17 = vsel %vm846_vm0, %v1365_v26, %v1366_v28  ;;  %v2848_v42 = vcombine.low %v2699_v35, %v3582_v36  ;;  %v2879_v28 = vcombine.low %v2735_v0, %v3568_v21  ;;  %v1645_v35 = vrot.slane %v1643_v4, 1 }
  0x6d   : > { %v1730_v21 = vsel %vm573_vm1, %v1725_v56, %v1729_v8  ;;  %v3703_v56 = vld [vmem:[%s3229_s19 + $0x44] ss:$0 sps:$4 sm:$0x11]  }
  0x6e   : > { %v1734_v52 = vshll.u32 %v2848_v42, 16  ;;  %v1732_v9 = vshrl.u32 %v2848_v42, 16  ;;  %v1901_v43 = vrot.slane %v2879_v28, 1  ;;  %v1905_v28 = vrot.slane %v3609_v1, 1 }
  0x6f   : > { %1299 = vrot.lane.b32.xlu1 %v1218_v7, %s3180_s23  ;;  %v3627_v7 = vld [vmem:[%s3229_s19 + $0x94] sm:$0xf] }
  0x70   : > { %1283 = vrot.lane.b32.xlu0 %v1122_v40, %s3180_s23  ;;  %v3632_v40 = vld [vmem:[%s3229_s19 + $0x34] sm:$0xf]  ;;  %v1736_v14 = vrot.slane %v1734_v52, 1  ;;  %v3639_v57 = vcombine.low %v269_v63, %v3627_v7 }
  0x71   : > { %v3642_v26 = vcombine.low %v253_v39, %v3632_v40 }
  0x72   : > { %4539 = vst [vmem:[#allocation3_spill] sm:$0xff] %v3639_v57  ;;  %v1737_v30 = vor.u32 %v1736_v14, %v1732_v9  ;;  %v721_v37 = vshll.u32 %v3639_v57, 16  ;;  %v2872_v9 = vcombine.low %v2728_v58, %v3588_v5 }
  0x73   : > { %1301 = vrot.lane.b32.xlu1 %v1230_v16, %s3180_s23  ;;  %v2727_v16 = vld [vmem:[%s3229_s19 + $0x30] sm:$0xe]  ;;  %4540 = vst [vmem:[#allocation4_spill] sm:$0xff] %v3642_v26  ;;  %v625_v13 = vshll.u32 %v3642_v26, 16  ;;  %v623_v62 = vshrl.u32 %v3642_v26, 16 }
  0x74   : > { %1285 = vrot.lane.b32.xlu0 %v1134_v24, %s3180_s23  ;;  %v1633_v24 = vrot.slane %v1631_v6, 1  ;;  %v2871_v27 = vcombine.low %v2727_v16, %v3576_v32  ;;  %v1742_v52 = vsel %vm573_vm1, %v1737_v30, %v1741_v10  ;;  %v723_v59 = vrot.slane %v721_v37, 1  ;;  %v305_v37 = vld [vmem:[%s3229_s19 + $0x90] sm:$0xe] }
  0x75   : > { %v627_v0 = vrot.slane %v625_v13, 1  ;;  %v1880_v10 = vrot.slane %v2872_v9, 1  ;;  %v738_v30 = vshll.u32 %v3694_v12, 16 }
  0x76   : > { %v1634_v32 = vsel %vm573_vm1, %v1629_v22, %v1633_v24  ;;  %v1877_v54 = vrot.slane %v2871_v27, 1  ;;  %v1881_v27 = vrot.slane %v3616_v55, 1 }
  0x77   : > { %1427 = vrot.lane.b32.xlu1 %v1391_v33, %s3181_s24  ;;  %v3648_v33 = vld [vmem:[%s3229_s19 + $0x98] ss:$0 sps:$4 sm:$0x11]   ;;  %v628_v16 = vor.u32 %v627_v0, %v623_v62  ;;  %v298_v62 = vld [vmem:[%s3229_s19 + $0x3c] sm:$0xe] }
  0x78   : > { %1411 = vrot.lane.b32.xlu0 %v1367_v17, %s3181_s24  ;;  %v3654_v17 = vld [vmem:[%s3229_s19 + $0x38] ss:$0 sps:$4 sm:$0x11]   ;;  %v726_v60 = vshll.u32 %v3648_v33, 16 }
  0x79   : > { %v630_v3 = vshll.u32 %v3654_v17, 16 }
  0x7b   : > { %1429 = vrot.lane.b32.xlu1 %v1394_v45, %s3181_s24  ;;  %v255_v45 = vld [vmem:[%s3229_s19 + $0x3c] sm:$0xf]  ;;  %v632_v5 = vrot.slane %v630_v3, 1 }
  0x7c   : > { %1413 = vrot.lane.b32.xlu0 %v1370_v48, %s3181_s24  ;;  %v2736_v48 = vld [vmem:[%s3229_s19 + $0x9c] sm:$0xe]  ;;  %v3686_v6 = vcombine.low %v255_v45, %v3667_v47 }
  0x7d   : > { %v2880_v51 = vcombine.low %v2736_v48, %v3582_v36  ;;  %v1879_v36 = vsel %vm846_vm0, %v1877_v54, %v1878_v34  ;;  %v633_v13 = vsel %vm573_vm1, %v628_v16, %v632_v5  ;;  %v1882_v34 = vsel %vm846_vm0, %v1880_v10, %v1881_v27  ;;  %v2623_v27 = vld [vmem:[%s3229_s19 + $0x48] sm:$0xf] }
  0x7e   : > { %4542 = vst [vmem:[#allocation6_spill] sm:$0xff] %v3686_v6  ;;  %v637_v8 = vshll.u32 %v3686_v6, 16  ;;  %v887_v10 = vrot.slane %v3694_v12, 1 }
  0x7f   : > { %1539 = vrot.lane.b32.xlu1 %v2847_v2, %s3182_s25  ;;  %v1641_v2 = vor.u32 %v1640_v20, %v1636_v15  ;;  %v728_v15 = vrot.slane %v726_v60, 1  ;;  %v1904_v22 = vrot.slane %v2880_v51, 1  ;;  %v2637_v51 = vld [vmem:[%s3229_s19 + $0x9c] sm:$0xf] }
  0x80   : > { %1523 = vrot.lane.b32.xlu0 %v2839_v19, %s3182_s25  ;;  %v271_v19 = vld [vmem:[%s3229_s19 + $0x9c] sm:$0xf]  ;;  %v639_v1 = vrot.slane %v637_v8, 1  ;;  %v3758_v8 = vld [vmem:[%s3229_s19 + $0xac] sm:$0xf] }
  0x81   : > { %v1646_v11 = vsel %vm573_vm1, %v1641_v2, %v1645_v35  ;;  %v1906_v48 = vsel %vm846_vm0, %v1904_v22, %v1905_v28 }
  0x83   : > { %1541 = vrot.lane.b32.xlu1 %v2848_v42, %s3182_s25  ;;  %v3662_v42 = vld [vmem:[%s3229_s19 + $0xa0] sm:$0xf] }
  0x84   : > { %1525 = vrot.lane.b32.xlu0 %v2840_v44, %s3182_s25  ;;  %v1902_v44 = vrot.slane %v3599_v46, 1  ;;  %v719_v46 = vshrl.u32 %v3639_v57, 16  ;;  %v3681_v61 = vcombine.low %v271_v19, %v3662_v42  ;;  %v635_v19 = vshrl.u32 %v3686_v6, 16 }
  0x86   : > { %4541 = vst [vmem:[#allocation5_spill] sm:$0xff] %v3681_v61  ;;  %v1903_v39 = vsel %vm846_vm0, %v1901_v43, %v1902_v44  ;;  %v724_v14 = vor.u32 %v723_v59, %v719_v46  ;;  %v733_v20 = vshll.u32 %v3681_v61, 16  ;;  %v731_v35 = vshrl.u32 %v3681_v61, 16  ;;  %v306_v59 = vld [vmem:[%s3229_s19 + $0x9c] sm:$0xe] }
  0x87   : > { %v3657_v41 = vpop.permute.xlu1 %1023  ;;  %1811 = vrot.lane.b32.xlu1 %v1730_v21, %s3183_s26  ;;  %v642_v43 = vshll.u32 %v3703_v56, 16  ;;  %v2785_v44 = vcombine.low %v305_v37, %v3627_v7  ;;  %v640_v58 = vor.u32 %v639_v1, %v635_v19  ;;  %v884_v7 = vrot.slane %v3648_v33, 1  ;;  %v2621_v33 = vld [vmem:[%s3229_s19 + $0x3c] sm:$0xf] }
  0x88   : > { %v3671_v49 = vpop.permute.xlu0 %1007  ;;  %1795 = vrot.lane.b32.xlu0 %v1634_v32, %s3183_s26  ;;  %v729_v2 = vsel %vm573_vm1, %v724_v14, %v728_v15  ;;  %v735_v21 = vrot.slane %v733_v20, 1  ;;  %v297_v32 = vld [vmem:[%s3229_s19 + $0x30] sm:$0xe]  ;;  %v3742_v14 = vld [vmem:[%s3229_s19 + $0xa0] sm:$0xf]  ;;  %v2778_v20 = vcombine.low %v298_v62, %v3667_v47  ;;  %v863_v37 = vrot.slane %v3703_v56, 1 }
  0x89   : > { %v2777_v45 = vcombine.low %v297_v32, %v3632_v40  ;;  %v644_v46 = vrot.slane %v642_v43, 1  ;;  %v860_v40 = vrot.slane %v3654_v17, 1  ;;  %v883_v0 = vrot.slane %v2785_v44, 1  ;;  %v3778_v1 = vld [vmem:[%s3229_s19 + $0xa4] ss:$0 sps:$4 sm:$0x11]  }
  0x8a   : > { %v2801_v5 = vcombine.low %v2637_v51, %v3742_v14  ;;  %v3794_v62 = vld [vmem:[%s3229_s19 + $0xb0] ss:$0 sps:$4 sm:$0x11]  }
  0x8b   : > { %v3689_v63 = vpop.permute.xlu1 %911  ;;  %1813 = vrot.lane.b32.xlu1 %v1742_v52, %s3183_s26  ;;  %v736_v52 = vor.u32 %v735_v21, %v731_v35  ;;  %v859_v3 = vrot.slane %v2777_v45, 1  ;;  %v645_v15 = vsel %vm573_vm1, %v640_v58, %v644_v46  ;;  %v885_v22 = vsel %vm846_vm0, %v883_v0, %v884_v7  ;;  %v3800_v51 = vld [vmem:[%s3229_s19 + $0x50] ss:$0 sps:$4 sm:$0x11]  }
  0x8c   : > { %1797 = vrot.lane.b32.xlu0 %v1646_v11, %s3183_s26  ;;  %v740_v11 = vrot.slane %v738_v30, 1  ;;  %v3766_v30 = vld [vmem:[%s3229_s19 + $0x4c] sm:$0xf]  ;;  %v862_v21 = vrot.slane %v2778_v20, 1  ;;  %v1234_v12 = vshll.u32 %v2801_v5, 16 }
  0x8d   : > { %v3699_v4 = vpop.permute.xlu0 %895  ;;  %v861_v35 = vsel %vm846_vm0, %v859_v3, %v860_v40  ;;  %v2794_v19 = vcombine.low %v2623_v27, %v3766_v30 }
  0x8e   : > { %v741_v9 = vsel %vm573_vm1, %v736_v52, %v740_v11  ;;  %v864_v56 = vsel %vm846_vm0, %v862_v21, %v863_v37  ;;  %v1236_v46 = vrot.slane %v1234_v12, 1  ;;  %v1155_v37 = vshll.u32 %v3800_v51, 16 }
  0x8f   : > { %1939 = vrot.lane.b32.xlu1 %v1903_v39, %s3184_s27  ;;  %v2786_v39 = vcombine.low %v306_v59, %v3662_v42  ;;  %v2639_v42 = vld [vmem:[%s3229_s19 + $0xa8] sm:$0xf]  ;;  %v1150_v58 = vshll.u32 %v2794_v19, 16  ;;  %v1239_v59 = vshll.u32 %v3778_v1, 16  ;;  %v1148_v21 = vshrl.u32 %v2794_v19, 16 }
  0x90   : > { %v3707_v24 = vpop.permute.xlu1 %913  ;;  %1923 = vrot.lane.b32.xlu0 %v1879_v36, %s3184_s27  ;;  %v3750_v36 = vld [vmem:[%s3229_s19 + $0x40] sm:$0xf] }
  0x91   : > { %v886_v28 = vrot.slane %v2786_v39, 1  ;;  %v2793_v47 = vcombine.low %v2621_v33, %v3750_v36  ;;  %v1241_v20 = vrot.slane %v1239_v59, 1  ;;  %v2666_v59 = vld [vmem:[%s3229_s19 + $0x48] sm:$0xe] }
  0x92   : > { %v3720_v55 = vpop.permute.xlu0 %897 }
  0x93   : > { %790 = vrot.lane.b32.xlu1 %v729_v2, %s3179_s22  ;;  %v888_v43 = vsel %vm846_vm0, %v886_v28, %v887_v10  ;;  %v1138_v44 = vshll.u32 %v2793_v47, 16  ;;  %v1136_v7 = vshrl.u32 %v2793_v47, 16  ;;  %v1251_v28 = vshll.u32 %v3794_v62, 16  ;;  %v2665_v10 = vld [vmem:[%s3229_s19 + $0x3c] sm:$0xe] }
  0x94   : > { %774 = vrot.lane.b32.xlu0 %v633_v13, %s3179_s22  ;;  %v2802_v13 = vcombine.low %v2639_v42, %v3758_v8 }
  0x95   : > { %v3727_v54 = vpop.permute.xlu1 %768  ;;  %v1140_v40 = vrot.slane %v1138_v44, 1  ;;  %v3818_v44 = vld [vmem:[%s3229_s19 + $0xac] sm:$0xf] }
  0x96   : > { %v3731_v60 = vpop.permute.xlu0 %766  ;;  %v1246_v11 = vshll.u32 %v2802_v13, 16  ;;  %v1244_v33 = vshrl.u32 %v2802_v13, 16 }
  0x97   : > { %1941 = vrot.lane.b32.xlu1 %v1906_v48, %s3184_s27  ;;  %v3786_v48 = vld [vmem:[%s3229_s19 + $0x44] ss:$0 sps:$4 sm:$0x11]   ;;  %v1141_v42 = vor.u32 %v1140_v40, %v1136_v7  ;;  %v1157_v40 = vrot.slane %v1155_v37, 1 }
  0x98   : > { %1925 = vrot.lane.b32.xlu0 %v1882_v34, %s3184_s27  ;;  %v1232_v34 = vshrl.u32 %v2801_v5, 16  ;;  %v1143_v3 = vshll.u32 %v3786_v48, 16  ;;  %v1372_v37 = vrot.slane %v3786_v48, 1 }
  0x99   : > { %v3745_v17 = vpop.permute.xlu1 %784 }
  0x9a   : > { %v3752_v16 = vpop.permute.xlu0 %782  ;;  %v1237_v39 = vor.u32 %v1236_v46, %v1232_v34  ;;  %v1253_v46 = vrot.slane %v1251_v28, 1 }
  0x9b   : > { %792 = vrot.lane.b32.xlu1 %v741_v9, %s3179_s22 }
  0x9c   : > { %776 = vrot.lane.b32.xlu0 %v645_v15, %s3179_s22  ;;  %v2673_v15 = vld [vmem:[%s3229_s19 + $0x9c] sm:$0xe]  ;;  %v1242_v34 = vsel %vm573_vm1, %v1237_v39, %v1241_v20  ;;  %v3839_v39 = vld [vmem:[%s3229_s19 + $0xb8] sm:$0xf] }
  0x9d   : > { %v3768_v2 = vpop.permute.xlu1 %1025 }
  0x9e   : > { %v3772_v32 = vpop.permute.xlu0 %1009 }
  0x9f   : > { %919 = vrot.lane.b32.xlu1 %v885_v22, %s3178_s21  ;;  %v1248_v22 = vrot.slane %v1246_v11, 1  ;;  %v2674_v11 = vld [vmem:[%s3229_s19 + $0xa8] sm:$0xe] }
  0xa0   : > { %903 = vrot.lane.b32.xlu0 %v861_v35, %s3178_s21  ;;  %v1145_v35 = vrot.slane %v1143_v3, 1  ;;  %v2685_v3 = vld [vmem:[%s3229_s19 + $0x48] sm:$0xf] }
  0xa1   : > { %v3782_v45 = vpop.permute.xlu1 %1295 }
  0xa2   : > { %v3788_v52 = vpop.permute.xlu0 %1279 }
  0xa3   : > { %921 = vrot.lane.b32.xlu1 %v888_v43, %s3178_s21  ;;  %v2701_v43 = vld [vmem:[%s3229_s19 + $0xa8] sm:$0xf] }
  0xa4   : > { %905 = vrot.lane.b32.xlu0 %v864_v56, %s3178_s21  ;;  %v2825_v56 = vcombine.low %v2665_v10, %v3750_v36  ;;  %v3832_v36 = vcombine.low %v2701_v43, %v3818_v44  ;;  %v3835_v10 = vld [vmem:[%s3229_s19 + $0x4c] sm:$0xf] }
  0xa5   : > { %v3796_v0 = vpop.permute.xlu1 %1297 }
  0xa6   : > { %v3802_v9 = vpop.permute.xlu0 %1281 }
  0xa7   : > { %1031 = vrot.lane.b32.xlu1 %v2801_v5, %s3177_s20  ;;  %v1152_v5 = vrot.slane %v1150_v58, 1  ;;  %v1249_v58 = vor.u32 %v1248_v22, %v1244_v33  ;;  %v2834_v33 = vcombine.low %v2674_v11, %v3758_v8  ;;  %v2826_v22 = vcombine.low %v2666_v59, %v3766_v30  ;;  %v3859_v30 = vld [vmem:[%s3229_s19 + $0x58] sm:$0xf]  ;;  %v3865_v11 = vld [vmem:[%s3229_s19 + $0xb0] ss:$0 sps:$4 sm:$0x11]  }
  0xa8   : > { %1015 = vrot.lane.b32.xlu0 %v2793_v47, %s3177_s20  ;;  %v2833_v47 = vcombine.low %v2673_v15, %v3742_v14  ;;  %v1146_v14 = vsel %vm573_vm1, %v1141_v42, %v1145_v35  ;;  %v1396_v42 = vrot.slane %v3778_v1, 1  ;;  %v1371_v35 = vrot.slane %v2825_v56, 1  ;;  %v2687_v1 = vld [vmem:[%s3229_s19 + $0x54] sm:$0xf] }
  0xa9   : > { %v3809_v27 = vpop.permute.xlu1 %1423  ;;  %v1254_v28 = vsel %vm573_vm1, %v1249_v58, %v1253_v46  ;;  %v3852_v8 = vcombine.low %v2685_v3, %v3835_v10  ;;  %v1746_v56 = vshll.u32 %v3832_v36, 16  ;;  %v1399_v58 = vrot.slane %v3794_v62, 1 }
  0xaa   : > { %v3812_v12 = vpop.permute.xlu0 %1407  ;;  %v1395_v20 = vrot.slane %v2833_v47, 1  ;;  %v1374_v46 = vrot.slane %v2826_v22, 1  ;;  %v1375_v59 = vrot.slane %v3800_v51, 1  ;;  %v1373_v3 = vsel %vm846_vm0, %v1371_v35, %v1372_v37  ;;  %v3891_v35 = vld [vmem:[%s3229_s19 + $0x50] ss:$0 sps:$4 sm:$0x11]  }
  0xab   : > { %1033 = vrot.lane.b32.xlu1 %v2802_v13, %s3177_s20  ;;  %v1153_v13 = vor.u32 %v1152_v5, %v1148_v21  ;;  %v1744_v51 = vshrl.u32 %v3832_v36, 16  ;;  %v1969_v22 = vsel %vm1951_vm3, %v3261_v18, %v3752_v16  ;;  %v3901_v16 = vld [vmem:[%s3229_s19 + $0xbc] ss:$0 sps:$4 sm:$0x11]  }
  0xac   : > { %1017 = vrot.lane.b32.xlu0 %v2794_v19, %s3177_s20  ;;  %v2703_v19 = vld [vmem:[%s3229_s19 + $0xb4] sm:$0xf]  ;;  %v1397_v48 = vsel %vm846_vm0, %v1395_v20, %v1396_v42  ;;  %v1748_v20 = vrot.slane %v1746_v56, 1  ;;  %v1751_v42 = vshll.u32 %v3865_v11, 16 }
  0xad   : > { %v3825_v7 = vpop.permute.xlu1 %1425  ;;  %v1158_v5 = vsel %vm573_vm1, %v1153_v13, %v1157_v40  ;;  %v3855_v47 = vcombine.low %v2703_v19, %v3839_v39  ;;  %v3874_v13 = vcombine.low %v2687_v1, %v3859_v30  ;;  %v1650_v19 = vshll.u32 %v3852_v8, 16 }
  0xae   : > { %v3829_v15 = vpop.permute.xlu0 %1409  ;;  %v1376_v1 = vsel %vm846_vm0, %v1374_v46, %v1375_v59  ;;  %v3909_v46 = vld [vmem:[%s3229_s19 + $0x5c] ss:$0 sps:$4 sm:$0x11]  }
  0xaf   : > { %1303 = vrot.lane.b32.xlu1 %v1242_v34, %s3180_s23  ;;  %v1398_v34 = vrot.slane %v2834_v33, 1  ;;  %v1758_v33 = vshll.u32 %v3855_v47, 16  ;;  %v1662_v18 = vshll.u32 %v3874_v13, 16  ;;  %v1756_v6 = vshrl.u32 %v3855_v47, 16 }
  0xb0   : > { %1287 = vrot.lane.b32.xlu0 %v1146_v14, %s3180_s23  ;;  %v2737_v14 = vld [vmem:[%s3229_s19 + $0xa8] sm:$0xe]  ;;  %v1667_v57 = vshll.u32 %v3909_v46, 16 }
  0xb1   : > { %v3847_v21 = vpop.permute.xlu1 %1535  ;;  %v1400_v37 = vsel %vm846_vm0, %v1398_v34, %v1399_v58  ;;  %v1760_v61 = vrot.slane %v1758_v33, 1  ;;  %v1749_v34 = vor.u32 %v1748_v20, %v1744_v51  ;;  %v1753_v58 = vrot.slane %v1751_v42, 1  ;;  %v273_v20 = vld [vmem:[%s3229_s19 + $0xa8] sm:$0xf]  ;;  %v3921_v42 = vld [vmem:[%s3229_s19 + $0xac] sm:$0xf] }
  0xb2   : > { %v3861_v43 = vpop.permute.xlu0 %1519  ;;  %v1763_v33 = vshll.u32 %v3901_v16, 16  ;;  %v1664_v51 = vrot.slane %v1662_v18, 1 }
  0xb3   : > { %1305 = vrot.lane.b32.xlu1 %v1254_v28, %s3180_s23  ;;  %v2881_v28 = vcombine.low %v2737_v14, %v3818_v44  ;;  %v1648_v44 = vshrl.u32 %v3852_v8, 16  ;;  %v1652_v14 = vrot.slane %v1650_v19, 1  ;;  %v1660_v19 = vshrl.u32 %v3874_v13, 16 }
  0xb4   : > { %1289 = vrot.lane.b32.xlu0 %v1158_v5, %s3180_s23  ;;  %v1953_v5 = vsel %vm1951_vm3, %v3266_v23, %v3731_v60  ;;  %v2002_v23 = vsel %vm1984_vm4, %v1969_v22, %v3689_v63  ;;  %v1754_v18 = vsel %vm573_vm1, %v1749_v34, %v1753_v58 }
  0xb5   : > { %v3876_v40 = vpop.permute.xlu1 %1537  ;;  %v1986_v59 = vsel %vm1984_vm4, %v1953_v5, %v3699_v4  ;;  %v2035_v4 = vsel %vm2017_vm5, %v2002_v23, %v3657_v41  ;;  %v1653_v5 = vor.u32 %v1652_v14, %v1648_v44  ;;  %v3927_v26 = vrot.slane %v2881_v28, 1  ;;  %v3939_v41 = vld [vmem:[%s3229_s19 + $0x4c] sm:$0xf] }
  0xb6   : > { %v3881_v62 = vpop.permute.xlu0 %1521  ;;  %v1665_v14 = vor.u32 %v1664_v51, %v1660_v19  ;;  %v4000_v51 = vld [vmem:[%s3229_s19 + $0xb8] sm:$0xf] }
  0xb7   : > { %1431 = vrot.lane.b32.xlu1 %v1397_v48, %s3181_s24  ;;  %v2729_v48 = vld [vmem:[%s3229_s19 + $0x48] sm:$0xe] }
  0xb8   : > { %1415 = vrot.lane.b32.xlu0 %v1373_v3, %s3181_s24  ;;  %v1655_v3 = vshll.u32 %v3891_v35, 16  ;;  %v2873_v63 = vcombine.low %v2729_v48, %v3835_v10  ;;  %v2019_v10 = vsel %vm2017_vm5, %v1986_v59, %v3671_v49  ;;  %v3948_v49 = vcombine.low %v273_v20, %v3921_v42 }
  0xb9   : > { %v1808_v56 = vpop.permute.xlu1 %1807 }
  0xba   : > { %v1792_v60 = vpop.permute.xlu0 %1791 }
  0xbb   : > { %1433 = vrot.lane.b32.xlu1 %v1400_v37, %s3181_s24  ;;  %v1761_v37 = vor.u32 %v1760_v61, %v1756_v6  ;;  %v2052_v61 = vsel %vm2050_vm6, %v2019_v10, %v3788_v52  ;;  %v1765_v52 = vrot.slane %v1763_v33, 1  ;;  %v275_v33 = vld [vmem:[%s3229_s19 + $0xb4] sm:$0xf] }
  0xbc   : > { %1417 = vrot.lane.b32.xlu0 %v1376_v1, %s3181_s24  ;;  %v2068_v1 = vsel %vm2050_vm6, %v2035_v4, %v3782_v45  ;;  %v1657_v45 = vrot.slane %v1655_v3, 1  ;;  %v2085_v28 = vsel %vm2083_vm7, %v2052_v61, %v3812_v12  ;;  %v3963_v12 = vcombine.low %v257_v29, %v3939_v41 }
  0xbd   : > { %v3925_v22 = vpop.permute.xlu1 %1809  ;;  %v2101_v6 = vsel %vm2083_vm7, %v2068_v1, %v3809_v27  ;;  %v1971_v27 = vsel %vm1951_vm3, %v3273_v31, %v3745_v17  ;;  %v1669_v31 = vrot.slane %v1667_v57, 1  ;;  %v3971_v17 = vld [vmem:[%s3229_s19 + $0xb0] ss:$0 sps:$4 sm:$0x11]   ;;  %v1908_v29 = vrot.slane %v3865_v11, 1 }
  0xbe   : > { %v3933_v48 = vpop.permute.xlu0 %1793  ;;  %v2134_v44 = vsel %vm2116_vm8, %v2101_v6, %v3847_v21  ;;  %v1955_v21 = vsel %vm1951_vm3, %v3279_v38, %v3727_v54  ;;  %v1883_v38 = vrot.slane %v2873_v63, 1  ;;  %v745_v54 = vshll.u32 %v3948_v49, 16 }
  0xbf   : > { %1543 = vrot.lane.b32.xlu1 %v3832_v36, %s3182_s25  ;;  %v2118_v36 = vsel %vm2116_vm8, %v2085_v28, %v3861_v43  ;;  %v2167_v23 = vsel %vm2149_vm9, %v2134_v44, %v1808_v56  ;;  %v2004_v56 = vsel %vm1984_vm4, %v1971_v27, %v3707_v24  ;;  %v1658_v57 = vsel %vm573_vm1, %v1653_v5, %v1657_v45  ;;  %v259_v5 = vld [vmem:[%s3229_s19 + $0x54] sm:$0xf] }
  0xc0   : > { %1527 = vrot.lane.b32.xlu0 %v3852_v8, %s3182_s25  ;;  %v2151_v8 = vsel %vm2149_vm9, %v2118_v36, %v1792_v60  ;;  %v1884_v11 = vrot.slane %v3891_v35, 1  ;;  %v3988_v60 = vld [vmem:[%s3229_s19 + $0x50] ss:$0 sps:$4 sm:$0x11]   ;;  %v2037_v3 = vsel %vm2017_vm5, %v2004_v56, %v3768_v2  ;;  %v1988_v24 = vsel %vm1984_vm4, %v1955_v21, %v3720_v55  ;;  %v2738_v45 = vld [vmem:[%s3229_s19 + $0xb4] sm:$0xe] }
  0xc1   : > { %v1936_v34 = vpop.permute.xlu1 %1935  ;;  %v649_v63 = vshll.u32 %v3963_v12, 16  ;;  %v2021_v35 = vsel %vm2017_vm5, %v1988_v24, %v3772_v32  ;;  %v2070_v2 = vsel %vm2050_vm6, %v2037_v3, %v3796_v0  ;;  %v1670_v55 = vsel %vm573_vm1, %v1665_v14, %v1669_v31  ;;  %v2730_v28 = vld [vmem:[%s3229_s19 + $0x54] sm:$0xe] }
  0xc2   : > { %v1920_v58 = vpop.permute.xlu0 %1919  ;;  %v2200_v59 = vsel %vm2182_vm10, %v2167_v23, %v1936_v34  ;;  %v750_v4 = vshll.u32 %v3971_v17, 16  ;;  %v2054_v1 = vsel %vm2050_vm6, %v2021_v35, %v3802_v9  ;;  %v2103_v10 = vsel %vm2083_vm7, %v2070_v2, %v3825_v7 }
  0xc3   : > { %1545 = vrot.lane.b32.xlu1 %v3855_v47, %s3182_s25  ;;  %v2184_v43 = vsel %vm2182_vm10, %v2151_v8, %v1920_v58  ;;  %2949 = vmatprep.mubr.msk.bf16.mxu1 %vm2242_vm11, %v2200_v59  ;;  %v1766_v47 = vsel %vm573_vm1, %v1761_v37, %v1765_v52  ;;  %v4012_v37 = vld [vmem:[%s3229_s19 + $0x58] sm:$0xf]  ;;  %v747_v32 = vrot.slane %v745_v54, 1  ;;  %v647_v0 = vshrl.u32 %v3963_v12, 16 }
  0xc4   : > { %1529 = vrot.lane.b32.xlu0 %v3874_v13, %s3182_s25  ;;  %2933 = vmatprep.mubr.msk.bf16.mxu0 %vm2242_vm11, %v2184_v43  ;;  %v743_v13 = vshrl.u32 %v3948_v49, 16  ;;  %v2087_v61 = vsel %vm2083_vm7, %v2054_v1, %v3829_v15  ;;  %v2136_v6 = vsel %vm2116_vm8, %v2103_v10, %v3876_v40  ;;  %v654_v9 = vshll.u32 %v3988_v60, 16  ;;  %v4051_v8 = vld [vmem:[%s3229_s19 + $0xbc] ss:$0 sps:$4 sm:$0x11]  }
  0xc5   : > { %v3994_v19 = vpop.permute.xlu1 %786  ;;  %v4029_v44 = vcombine.low %v275_v33, %v4000_v51  ;;  %v2120_v7 = vsel %vm2116_vm8, %v2087_v61, %v3881_v62  ;;  %v651_v15 = vrot.slane %v649_v63, 1  ;;  %v4036_v40 = vcombine.low %v259_v5, %v4012_v37  ;;  %v4058_v43 = vld [vmem:[%s3229_s19 + $0x5c] ss:$0 sps:$4 sm:$0x11]  }
  0xc6   : > { %v4006_v20 = vpop.permute.xlu0 %770  ;;  %v2153_v14 = vsel %vm2149_vm9, %v2120_v7, %v3933_v48  ;;  %v2882_v23 = vcombine.low %v2738_v45, %v3839_v39  ;;  %v2874_v62 = vcombine.low %v2730_v28, %v3859_v30  ;;  %v748_v48 = vor.u32 %v747_v32, %v743_v13  ;;  %v308_v28 = vld [vmem:[%s3229_s19 + $0xb4] sm:$0xe] }
  0xc7   : > { %1815 = vrot.lane.b32.xlu1 %v1754_v18, %s3183_s26  ;;  %v2169_v18 = vsel %vm2149_vm9, %v2136_v6, %v3925_v22  ;;  %v1909_v22 = vsel %vm846_vm0, %v3927_v26, %v1908_v29  ;;  %v752_v21 = vrot.slane %v750_v4, 1  ;;  %v757_v39 = vshll.u32 %v4029_v44, 16  ;;  %v300_v7 = vld [vmem:[%s3229_s19 + $0x54] sm:$0xe] }
  0xc8   : > { %1799 = vrot.lane.b32.xlu0 %v1658_v57, %s3183_s26  ;;  %v1885_v58 = vsel %vm846_vm0, %v1883_v38, %v1884_v11  ;;  %v652_v59 = vor.u32 %v651_v15, %v647_v0  ;;  %v656_v31 = vrot.slane %v654_v9, 1  ;;  %v661_v54 = vshll.u32 %v4036_v40, 16 }
  0xc9   : > { %v1938_v52 = vpop.permute.xlu1 %1937  ;;  %v1910_v26 = vrot.slane %v2882_v23, 1  ;;  %v1911_v29 = vrot.slane %v3901_v16, 1  ;;  %v1886_v57 = vrot.slane %v2874_v62, 1  ;;  %v753_v38 = vsel %vm573_vm1, %v748_v48, %v752_v21  ;;  %v2641_v62 = vld [vmem:[%s3229_s19 + $0xb4] sm:$0xf] }
  0xca   : > { %v2202_v27 = vsel %vm2182_vm10, %v2169_v18, %v1938_v52  ;;  %v1922_v36 = vpop.permute.xlu0 %1921  ;;  %v755_v11 = vshrl.u32 %v4029_v44, 16  ;;  %v759_v3 = vrot.slane %v757_v39, 1  ;;  %v762_v24 = vshll.u32 %v4051_v8, 16  ;;  %v2625_v48 = vld [vmem:[%s3229_s19 + $0x54] sm:$0xf] }
  0xcb   : > { %v2186_v34 = vsel %vm2182_vm10, %v2153_v14, %v1922_v36  ;;  %1817 = vrot.lane.b32.xlu1 %v1766_v47, %s3183_s26  ;;  %2950 = vmatmul.mubr.msk.bf16.vlgmr.msra.gmra.mxu1 %vm2242_vm11, %v2202_v27  ;;  %v1887_v47 = vrot.slane %v3909_v46, 1  ;;  %v657_v63 = vsel %vm573_vm1, %v652_v59, %v656_v31  ;;  %v659_v33 = vshrl.u32 %v4036_v40, 16  ;;  %v307_v46 = vld [vmem:[%s3229_s19 + $0xa8] sm:$0xe] }
  0xcc   : > { %1801 = vrot.lane.b32.xlu0 %v1670_v55, %s3183_s26  ;;  %2934 = vmatmul.mubr.msk.bf16.vlgmr.msra.gmra.mxu0 %vm2242_vm11, %v2186_v34  ;;  %v663_v35 = vrot.slane %v661_v54, 1  ;;  %v666_v16 = vshll.u32 %v4058_v43, 16  ;;  %v299_v55 = vld [vmem:[%s3229_s19 + $0x48] sm:$0xe]  ;;  %v1912_v4 = vsel %vm846_vm0, %v1910_v26, %v1911_v29  ;;  %v760_v5 = vor.u32 %v759_v3, %v755_v11  ;;  %v4103_v34 = vld [vmem:[%s3229_s19 + $0xb8] sm:$0xf] }
  0xcd   : > { %v4054_v30 = vpop.permute.xlu1 %788  ;;  %v764_v1 = vrot.slane %v762_v24, 1  ;;  %v2787_v10 = vcombine.low %v307_v46, %v3921_v42  ;;  %v1888_v0 = vsel %vm846_vm0, %v1886_v57, %v1887_v47  ;;  %v2779_v45 = vcombine.low %v299_v55, %v3939_v41  ;;  %v2643_v26 = vld [vmem:[%s3229_s19 + $0xc0] sm:$0xf]  ;;  %v4123_v29 = vld [vmem:[%s3229_s19 + $0xc4] sm:$0xf] }
  0xce   : > { %v4061_v56 = vpop.permute.xlu0 %772  ;;  %v664_v61 = vor.u32 %v663_v35, %v659_v33  ;;  %v668_v6 = vrot.slane %v666_v16, 1  ;;  %v890_v52 = vrot.slane %v3971_v17, 1  ;;  %v2788_v15 = vcombine.low %v308_v28, %v4000_v51  ;;  %v4109_v17 = vld [vmem:[%s3229_s19 + $0x58] sm:$0xf]  ;;  %v2627_v47 = vld [vmem:[%s3229_s19 + $0x60] sm:$0xf] }
  0xcf   : > { %1943 = vrot.lane.b32.xlu1 %v1909_v22, %s3184_s27  ;;  %v765_v42 = vsel %vm573_vm1, %v760_v5, %v764_v1  ;;  %v889_v18 = vrot.slane %v2787_v10, 1  ;;  %v865_v27 = vrot.slane %v2779_v45, 1  ;;  %v866_v36 = vrot.slane %v3988_v60, 1  ;;  %v4139_v24 = vld [vmem:[%s3229_s19 + $0x5c] ss:$0 sps:$4 sm:$0x11]  }
  0xd0   : > { %1927 = vrot.lane.b32.xlu0 %v1885_v58, %s3184_s27  ;;  %v669_v41 = vsel %vm573_vm1, %v664_v61, %v668_v6  ;;  %v2780_v23 = vcombine.low %v300_v7, %v4012_v37  ;;  %v892_v51 = vrot.slane %v2788_v15, 1  ;;  %v893_v37 = vrot.slane %v4051_v8, 1  ;;  %v4133_v8 = vld [vmem:[%s3229_s19 + $0xbc] ss:$0 sps:$4 sm:$0x11]  }
  0xd1   : > { %v4070_v13 = vpop.permute.xlu1 %915  ;;  %v891_v60 = vsel %vm846_vm0, %v889_v18, %v890_v52  ;;  %v2803_v21 = vcombine.low %v2641_v62, %v4103_v34  ;;  %v867_v58 = vsel %vm846_vm0, %v865_v27, %v866_v36  ;;  %v869_v31 = vrot.slane %v4058_v43, 1  ;;  %v4152_v10 = vld [vmem:[%s3229_s19 + $0xc8] ss:$0 sps:$4 sm:$0x11]  }
  0xd2   : > { %v4076_v2 = vpop.permute.xlu0 %899  ;;  %v868_v59 = vrot.slane %v2780_v23, 1  ;;  %v2795_v54 = vcombine.low %v2625_v48, %v4109_v17  ;;  %v894_v11 = vsel %vm846_vm0, %v892_v51, %v893_v37  ;;  %v2804_v43 = vcombine.low %v2643_v26, %v4123_v29  ;;  %v4157_v28 = vld [vmem:[%s3229_s19 + $0x68] ss:$0 sps:$4 sm:$0x11]   ;;  %v2675_v37 = vld [vmem:[%s3229_s19 + $0xb4] sm:$0xe] }
  0xd3   : > { %794 = vrot.lane.b32.xlu1 %v753_v38, %s3179_s22  ;;  %v4129_v38 = vld [vmem:[%s3229_s19 + $0x64] sm:$0xf]  ;;  %v1258_v3 = vshll.u32 %v2803_v21, 16  ;;  %v1256_v55 = vshrl.u32 %v2803_v21, 16  ;;  %v1167_v1 = vshll.u32 %v4139_v24, 16  ;;  %v1275_v36 = vshll.u32 %v4152_v10, 16 }
  0xd4   : > { %778 = vrot.lane.b32.xlu0 %v657_v63, %s3179_s22  ;;  %v870_v33 = vsel %vm846_vm0, %v868_v59, %v869_v31  ;;  %v2796_v35 = vcombine.low %v2627_v47, %v4129_v38  ;;  %v1162_v16 = vshll.u32 %v2795_v54, 16  ;;  %v1160_v6 = vshrl.u32 %v2795_v54, 16 }
  0xd5   : > { %v4083_v32 = vpop.permute.xlu1 %917  ;;  %v1260_v5 = vrot.slane %v1258_v3, 1  ;;  %v1268_v52 = vshrl.u32 %v2804_v43, 16  ;;  %v1179_v51 = vshll.u32 %v4157_v28, 16  ;;  %v2835_v26 = vcombine.low %v2675_v37, %v4103_v34 }
  0xd6   : > { %v4088_v9 = vpop.permute.xlu0 %901  ;;  %v1164_v45 = vrot.slane %v1162_v16, 1  ;;  %v1174_v7 = vshll.u32 %v2796_v35, 16  ;;  %v1172_v48 = vshrl.u32 %v2796_v35, 16 }
  0xd7   : > { %1945 = vrot.lane.b32.xlu1 %v1912_v4, %s3184_s27  ;;  %v1263_v4 = vshll.u32 %v4133_v8, 16  ;;  %v1261_v15 = vor.u32 %v1260_v5, %v1256_v55  ;;  %v2676_v55 = vld [vmem:[%s3229_s19 + $0xc0] sm:$0xe]  ;;  %v1402_v5 = vrot.slane %v4133_v8, 1 }
  0xd8   : > { %1929 = vrot.lane.b32.xlu0 %v1888_v0, %s3184_s27  ;;  %v1270_v0 = vshll.u32 %v2804_v43, 16  ;;  %v1165_v62 = vor.u32 %v1164_v45, %v1160_v6 }
  0xd9   : > { %v4096_v14 = vpop.permute.xlu1 %1027  ;;  %v1265_v18 = vrot.slane %v1263_v4, 1  ;;  %v1401_v4 = vrot.slane %v2835_v26, 1 }
  0xda   : > { %v4105_v22 = vpop.permute.xlu0 %1011  ;;  %v1272_v27 = vrot.slane %v1270_v0, 1  ;;  %v4190_v0 = vld [vmem:[%s3229_s19 + $0xc4] sm:$0xf] }
  0xdb   : > { %796 = vrot.lane.b32.xlu1 %v765_v42, %s3179_s22  ;;  %v1266_v59 = vsel %vm573_vm1, %v1261_v15, %v1265_v18  ;;  %v1378_v18 = vrot.slane %v4139_v24, 1  ;;  %v2689_v15 = vld [vmem:[%s3229_s19 + $0x60] sm:$0xf]  ;;  %v1403_v24 = vsel %vm846_vm0, %v1401_v4, %v1402_v5  ;;  %v4241_v4 = vld [vmem:[%s3229_s19 + $0xd4] ss:$0 sps:$4 sm:$0x11]  }
  0xdc   : > { %780 = vrot.lane.b32.xlu0 %v669_v41, %s3179_s22  ;;  %v1169_v41 = vrot.slane %v1167_v1, 1  ;;  %v1273_v31 = vor.u32 %v1272_v27, %v1268_v52  ;;  %v2836_v1 = vcombine.low %v2676_v55, %v4123_v29  ;;  %v2707_v27 = vld [vmem:[%s3229_s19 + $0xcc] sm:$0xf] }
  0xdd   : > { %v4116_v39 = vpop.permute.xlu1 %1029 }
  0xde   : > { %v4125_v57 = vpop.permute.xlu0 %1013 }
  0xdf   : > { %923 = vrot.lane.b32.xlu1 %v891_v60, %s3178_s21  ;;  %v1176_v60 = vrot.slane %v1174_v7, 1 }
  0xe0   : > { %907 = vrot.lane.b32.xlu0 %v867_v58, %s3178_s21  ;;  %v2667_v58 = vld [vmem:[%s3229_s19 + $0x54] sm:$0xe] }
  0xe1   : > { %v4141_v63 = vpop.permute.xlu1 %1299  ;;  %v1177_v3 = vor.u32 %v1176_v60, %v1172_v48  ;;  %v2827_v16 = vcombine.low %v2667_v58, %v4109_v17  ;;  %v2705_v17 = vld [vmem:[%s3229_s19 + $0xc0] sm:$0xf]  ;;  %v4214_v60 = vld [vmem:[%s3229_s19 + $0xc8] ss:$0 sps:$4 sm:$0x11]  }
  0xe2   : > { %v4145_v46 = vpop.permute.xlu0 %1283  ;;  %v2851_v29 = vcombine.low %v2705_v17, %v4190_v0 }
  0xe3   : > { %925 = vrot.lane.b32.xlu1 %v894_v11, %s3178_s21  ;;  %v1170_v11 = vsel %vm573_vm1, %v1165_v62, %v1169_v41  ;;  %v1377_v7 = vrot.slane %v2827_v16, 1  ;;  %v4199_v41 = vld [vmem:[%s3229_s19 + $0x64] sm:$0xf]  ;;  %v1405_v62 = vrot.slane %v4152_v10, 1  ;;  %v1775_v16 = vshll.u32 %v4214_v60, 16 }
  0xe4   : > { %909 = vrot.lane.b32.xlu0 %v870_v33, %s3178_s21  ;;  %v1181_v33 = vrot.slane %v1179_v51, 1  ;;  %v2843_v48 = vcombine.low %v2689_v15, %v4199_v41  ;;  %v4230_v10 = vld [vmem:[%s3229_s19 + $0x68] ss:$0 sps:$4 sm:$0x11]  }
  0xe5   : > { %v4154_v61 = vpop.permute.xlu1 %1301  ;;  %v1379_v37 = vsel %vm846_vm0, %v1377_v7, %v1378_v18  ;;  %v1679_v17 = vshll.u32 %v4230_v10, 16  ;;  %v1973_v7 = vsel %vm1951_vm3, %v3414_v50, %v3994_v19 }
  0xe6   : > { %v4159_v42 = vpop.permute.xlu0 %1285  ;;  %v1182_v45 = vsel %vm573_vm1, %v1177_v3, %v1181_v33  ;;  %v1770_v3 = vshll.u32 %v2851_v29, 16 }
  0xe7   : > { %1035 = vrot.lane.b32.xlu1 %v2803_v21, %s3177_s20 }
  0xe8   : > { %1019 = vrot.lane.b32.xlu0 %v2795_v54, %s3177_s20  ;;  %v1277_v54 = vrot.slane %v1275_v36, 1  ;;  %v4207_v36 = vld [vmem:[%s3229_s19 + $0xd0] sm:$0xf]  ;;  %v1772_v18 = vrot.slane %v1770_v3, 1  ;;  %v1681_v3 = vrot.slane %v1679_v17, 1 }
  0xe9   : > { %v4164_v23 = vpop.permute.xlu1 %1427  ;;  %v4224_v26 = vcombine.low %v2707_v27, %v4207_v36  ;;  %v1957_v27 = vsel %vm1951_vm3, %v3417_v53, %v4006_v20  ;;  %v1787_v53 = vshll.u32 %v4241_v4, 16 }
  0xea   : > { %v4168_v21 = vpop.permute.xlu0 %1411  ;;  %v1278_v34 = vsel %vm573_vm1, %v1273_v31, %v1277_v54  ;;  %v2691_v31 = vld [vmem:[%s3229_s19 + $0x6c] sm:$0xf]  ;;  %v1990_v50 = vsel %vm1984_vm4, %v1957_v27, %v4076_v2 }
  0xeb   : > { %1037 = vrot.lane.b32.xlu1 %v2804_v43, %s3177_s20  ;;  %v1780_v15 = vshrl.u32 %v4224_v26, 16 }
  0xec   : > { %1021 = vrot.lane.b32.xlu0 %v2796_v35, %s3177_s20  ;;  %v2668_v35 = vld [vmem:[%s3229_s19 + $0x60] sm:$0xe] }
  0xed   : > { %v4175_v47 = vpop.permute.xlu1 %1429  ;;  %v2828_v52 = vcombine.low %v2668_v35, %v4129_v38  ;;  %v1404_v38 = vrot.slane %v2836_v1, 1  ;;  %v1768_v1 = vshrl.u32 %v2851_v29, 16 }
  0xee   : > { %v4180_v43 = vpop.permute.xlu0 %1413 }
  0xef   : > { %1307 = vrot.lane.b32.xlu1 %v1266_v59, %s3180_s23  ;;  %v1380_v58 = vrot.slane %v2828_v52, 1  ;;  %v1381_v59 = vrot.slane %v4157_v28, 1  ;;  %v1406_v33 = vsel %vm846_vm0, %v1404_v38, %v1405_v62  ;;  %v1674_v28 = vshll.u32 %v2843_v48, 16 }
  0xf0   : > { %1291 = vrot.lane.b32.xlu0 %v1170_v11, %s3180_s23  ;;  %v4227_v11 = vld [vmem:[%s3229_s19 + $0x70] sm:$0xf]  ;;  %v1672_v52 = vshrl.u32 %v2843_v48, 16  ;;  %v1777_v38 = vrot.slane %v1775_v16, 1  ;;  %v1773_v16 = vor.u32 %v1772_v18, %v1768_v1 }
  0xf1   : > { %v4192_v6 = vpop.permute.xlu1 %1539  ;;  %v1382_v35 = vsel %vm846_vm0, %v1380_v58, %v1381_v59  ;;  %v1676_v62 = vrot.slane %v1674_v28, 1 }
  0xf2   : > { %v4201_v8 = vpop.permute.xlu0 %1523 }
  0xf3   : > { %1309 = vrot.lane.b32.xlu1 %v1278_v34, %s3180_s23  ;;  %v4238_v34 = vcombine.low %v2691_v31, %v4227_v11  ;;  %v1677_v17 = vor.u32 %v1676_v62, %v1672_v52  ;;  %v1975_v52 = vsel %vm1951_vm3, %v3452_v25, %v4054_v30 }
  0xf4   : > { %1293 = vrot.lane.b32.xlu0 %v1182_v45, %s3180_s23  ;;  %v1782_v45 = vshll.u32 %v4224_v26, 16 }
  0xf5   : > { %v4216_v51 = vpop.permute.xlu1 %1541  ;;  %v1686_v20 = vshll.u32 %v4238_v34, 16  ;;  %v1684_v28 = vshrl.u32 %v4238_v34, 16  ;;  %v1682_v25 = vsel %vm573_vm1, %v1677_v17, %v1681_v3 }
  0xf6   : > { %v4221_v54 = vpop.permute.xlu0 %1525 }
  0xf7   : > { %1435 = vrot.lane.b32.xlu1 %v1403_v24, %s3181_s24  ;;  %v2006_v24 = vsel %vm1984_vm4, %v1973_v7, %v4070_v13  ;;  %v2023_v13 = vsel %vm2017_vm5, %v1990_v50, %v4105_v22  ;;  %v1688_v7 = vrot.slane %v1686_v20, 1 }
  0xf8   : > { %1419 = vrot.lane.b32.xlu0 %v1379_v37, %s3181_s24  ;;  %v4257_v37 = vld [vmem:[%s3229_s19 + $0x74] ss:$0 sps:$4 sm:$0x11]   ;;  %v2039_v19 = vsel %vm2017_vm5, %v2006_v24, %v4096_v14  ;;  %v2056_v2 = vsel %vm2050_vm6, %v2023_v13, %v4145_v46 }
  0xf9   : > { %v1812_v55 = vpop.permute.xlu1 %1811  ;;  %v2072_v59 = vsel %vm2050_vm6, %v2039_v19, %v4141_v63  ;;  %v2089_v22 = vsel %vm2083_vm7, %v2056_v2, %v4168_v21  ;;  %v1691_v46 = vshll.u32 %v4257_v37, 16  ;;  %v2732_v19 = vld [vmem:[%s3229_s19 + $0x6c] sm:$0xe] }
  0xfa   : > { %v1796_v5 = vpop.permute.xlu0 %1795  ;;  %v2105_v14 = vsel %vm2083_vm7, %v2072_v59, %v4164_v23  ;;  %v2122_v23 = vsel %vm2116_vm8, %v2089_v22, %v4201_v8  ;;  %v1893_v22 = vrot.slane %v4257_v37, 1 }
  0xfb   : > { %1437 = vrot.lane.b32.xlu1 %v1406_v33, %s3181_s24  ;;  %v1784_v33 = vrot.slane %v1782_v45, 1  ;;  %v2138_v63 = vsel %vm2116_vm8, %v2105_v14, %v4192_v6  ;;  %v1789_v45 = vrot.slane %v1787_v53, 1  ;;  %v2155_v18 = vsel %vm2149_vm9, %v2122_v23, %v1796_v5  ;;  %v4543_v5 = vld [vmem:[#allocation2_spill] sm:$0xff] }
  0xfc   : > { %1421 = vrot.lane.b32.xlu0 %v1382_v35, %s3181_s24  ;;  %v2739_v35 = vld [vmem:[%s3229_s19 + $0xc0] sm:$0xe]  ;;  %v1693_v30 = vrot.slane %v1691_v46, 1 }
  0xfd   : > { %v4263_v58 = vpop.permute.xlu1 %1813  ;;  %v1785_v24 = vor.u32 %v1784_v33, %v1780_v15  ;;  %v2883_v6 = vcombine.low %v2739_v35, %v4190_v0  ;;  %v1959_v0 = vsel %vm1951_vm3, %v4543_v5, %v4061_v56  ;;  %v2008_v15 = vsel %vm1984_vm4, %v1975_v52, %v4083_v32  ;;  %v2740_v32 = vld [vmem:[%s3229_s19 + $0xcc] sm:$0xe] }
  0xfe   : > { %v4271_v31 = vpop.permute.xlu0 %1797  ;;  %v1689_v56 = vor.u32 %v1688_v7, %v1684_v28  ;;  %v2884_v33 = vcombine.low %v2740_v32, %v4207_v36 }
  0xff   : > { %1547 = vrot.lane.b32.xlu1 %v2851_v29, %s3182_s25  ;;  %v2171_v29 = vsel %vm2149_vm9, %v2138_v63, %v1812_v55  ;;  %v1778_v55 = vsel %vm573_vm1, %v1773_v16, %v1777_v38  ;;  %v2041_v38 = vsel %vm2017_vm5, %v2008_v15, %v4116_v39  ;;  %v1913_v13 = vrot.slane %v2883_v6, 1 }
 0x100   : > { %1531 = vrot.lane.b32.xlu0 %v2843_v48, %s3182_s25  ;;  %v2731_v48 = vld [vmem:[%s3229_s19 + $0x60] sm:$0xe]  ;;  %v2074_v53 = vsel %vm2050_vm6, %v2041_v38, %v4154_v61  ;;  %v4544_v38 = vld [vmem:[#allocation3_spill] sm:$0xff] }
 0x101   : > { %v1940_v1 = vpop.permute.xlu1 %1939  ;;  %v2875_v50 = vcombine.low %v2731_v48, %v4199_v41  ;;  %v2107_v59 = vsel %vm2083_vm7, %v2074_v53, %v4175_v47  ;;  %v1914_v41 = vrot.slane %v4214_v60, 1 }
 0x102   : > { %v2204_v21 = vsel %vm2182_vm10, %v2171_v29, %v1940_v1  ;;  %v1924_v27 = vpop.permute.xlu0 %1923  ;;  %v2140_v3 = vsel %vm2116_vm8, %v2107_v59, %v4216_v51 }
 0x103   : > { %v2188_v8 = vsel %vm2182_vm10, %v2155_v18, %v1924_v27  ;;  %1549 = vrot.lane.b32.xlu1 %v4224_v26, %s3182_s25  ;;  %2953 = vmatprep.mubr.msk.bf16.mxu1 %vm2242_vm11, %v2204_v21  ;;  %v1992_v26 = vsel %vm1984_vm4, %v1959_v0, %v4088_v9  ;;  %v1790_v9 = vsel %vm573_vm1, %v1785_v24, %v1789_v45  ;;  %v1889_v14 = vrot.slane %v2875_v50, 1  ;;  %v4545_v50 = vld [vmem:[#allocation4_spill] sm:$0xff] }
 0x104   : > { %1533 = vrot.lane.b32.xlu0 %v4238_v34, %s3182_s25  ;;  %2937 = vmatprep.mubr.msk.bf16.mxu0 %vm2242_vm11, %v2188_v8  ;;  %v2025_v34 = vsel %vm2017_vm5, %v1992_v26, %v4125_v57  ;;  %v1890_v57 = vrot.slane %v4230_v10, 1  ;;  %v2173_v60 = vsel %vm2149_vm9, %v2140_v3, %v4263_v58  ;;  %v1694_v10 = vsel %vm573_vm1, %v1689_v56, %v1693_v30 }
 0x105   : > { %v4314_v62 = vpop.permute.xlu1 %790  ;;  %v2058_v39 = vsel %vm2050_vm6, %v2025_v34, %v4159_v42  ;;  %v2876_v42 = vcombine.low %v2732_v19, %v4227_v11  ;;  %v1916_v11 = vrot.slane %v2884_v33, 1  ;;  %v1917_v58 = vrot.slane %v4241_v4, 1 }
 0x106   : > { %v4323_v20 = vpop.permute.xlu0 %774  ;;  %v2091_v61 = vsel %vm2083_vm7, %v2058_v39, %v4180_v43  ;;  %v1977_v56 = vsel %vm1951_vm3, %v4544_v38, %v4314_v62 }
 0x107   : > { %1819 = vrot.lane.b32.xlu1 %v1778_v55, %s3183_s26  ;;  %v2124_v47 = vsel %vm2116_vm8, %v2091_v61, %v4221_v54  ;;  %v1915_v54 = vsel %vm846_vm0, %v1913_v13, %v1914_v41  ;;  %v1892_v35 = vrot.slane %v2876_v42, 1  ;;  %v1918_v17 = vsel %vm846_vm0, %v1916_v11, %v1917_v58 }
 0x108   : > { %1803 = vrot.lane.b32.xlu0 %v1682_v25, %s3183_s26  ;;  %v2157_v43 = vsel %vm2149_vm9, %v2124_v47, %v4271_v31  ;;  %v1891_v31 = vsel %vm846_vm0, %v1889_v14, %v1890_v57  ;;  %v1961_v32 = vsel %vm1951_vm3, %v4545_v50, %v4323_v20 }
 0x109   : > { %v1942_v2 = vpop.permute.xlu1 %1941  ;;  %v1894_v23 = vsel %vm846_vm0, %v1892_v35, %v1893_v22 }
 0x10a   : > { %v2206_v51 = vsel %vm2182_vm10, %v2173_v60, %v1942_v2  ;;  %v1926_v16 = vpop.permute.xlu0 %1925  ;;  %v4546_v2 = vld [vmem:[#allocation5_spill] sm:$0xff] }
 0x10b   : > { %v2190_v36 = vsel %vm2182_vm10, %v2157_v43, %v1926_v16  ;;  %1821 = vrot.lane.b32.xlu1 %v1790_v9, %s3183_s26  ;;  %2954 = vmatmul.mubr.msk.bf16.gmra.mxu1 %vm2242_vm11, %v2206_v51  ;;  %v4547_v43 = vld [vmem:[#allocation6_spill] sm:$0xff] }
 0x10c   : > { %1805 = vrot.lane.b32.xlu0 %v1694_v10, %s3183_s26  ;;  %2938 = vmatmul.mubr.msk.bf16.gmra.mxu0 %vm2242_vm11, %v2190_v36 }
 0x10d   : > { %v793_v28 = vpop.permute.xlu1 %792 }
 0x10e   : > { %v777_v63 = vpop.permute.xlu0 %776  ;;  %v1979_v10 = vsel %vm1951_vm3, %v4546_v2, %v793_v28 }
 0x10f   : > { %1947 = vrot.lane.b32.xlu1 %v1915_v54, %s3184_s27  ;;  %v1963_v51 = vsel %vm1951_vm3, %v4547_v43, %v777_v63 }
 0x110   : > { %1931 = vrot.lane.b32.xlu0 %v1891_v31, %s3184_s27 }
 0x111   : > { %v920_v46 = vpop.permute.xlu1 %919 }
 0x112   : > { %v904_v29 = vpop.permute.xlu0 %903  ;;  %v2010_v19 = vsel %vm1984_vm4, %v1977_v56, %v920_v46 }
 0x113   : > { %1949 = vrot.lane.b32.xlu1 %v1918_v17, %s3184_s27  ;;  %v1994_v34 = vsel %vm1984_vm4, %v1961_v32, %v904_v29 }
 0x114   : > { %1933 = vrot.lane.b32.xlu0 %v1894_v23, %s3184_s27 }
 0x115   : > { %v922_v4 = vpop.permute.xlu1 %921 }
 0x116   : > { %v906_v1 = vpop.permute.xlu0 %905  ;;  %v2012_v16 = vsel %vm1984_vm4, %v1979_v10, %v922_v4 }
 0x117   : > { %v1996_v36 = vsel %vm1984_vm4, %v1963_v51, %v906_v1 }
 0x119   : > { %v1032_v45 = vpop.permute.xlu1 %1031 }
 0x11a   : > { %v1016_v7 = vpop.permute.xlu0 %1015  ;;  %v2043_v53 = vsel %vm2017_vm5, %v2010_v19, %v1032_v45 }
 0x11b   : > { %v2027_v13 = vsel %vm2017_vm5, %v1994_v34, %v1016_v7 }
 0x11d   : > { %v1034_v37 = vpop.permute.xlu1 %1033 }
 0x11e   : > { %v1018_v18 = vpop.permute.xlu0 %1017  ;;  %v2045_v54 = vsel %vm2017_vm5, %v2012_v16, %v1034_v37 }
 0x11f   : > { %v2029_v58 = vsel %vm2017_vm5, %v1996_v36, %v1018_v18 }
 0x121   : > { %v1304_v21 = vpop.permute.xlu1 %1303 }
 0x122   : > { %v1288_v27 = vpop.permute.xlu0 %1287  ;;  %v2076_v39 = vsel %vm2050_vm6, %v2043_v53, %v1304_v21 }
 0x123   : > { %v2060_v41 = vsel %vm2050_vm6, %v2027_v13, %v1288_v27 }
 0x125   : > { %v1306_v24 = vpop.permute.xlu1 %1305 }
 0x126   : > { %v1290_v6 = vpop.permute.xlu0 %1289  ;;  %v2078_v28 = vsel %vm2050_vm6, %v2045_v54, %v1306_v24 }
 0x127   : > { %v2062_v35 = vsel %vm2050_vm6, %v2029_v58, %v1290_v6 }
 0x129   : > { %v1432_v48 = vpop.permute.xlu1 %1431 }
 0x12a   : > { %v1416_v52 = vpop.permute.xlu0 %1415  ;;  %v2109_v62 = vsel %vm2083_vm7, %v2076_v39, %v1432_v48 }
 0x12b   : > { %v2093_v57 = vsel %vm2083_vm7, %v2060_v41, %v1416_v52 }
 0x12d   : > { %v1434_v8 = vpop.permute.xlu1 %1433 }
 0x12e   : > { %v1418_v55 = vpop.permute.xlu0 %1417  ;;  %v2111_v22 = vsel %vm2083_vm7, %v2078_v28, %v1434_v8 }
 0x12f   : > { %v2095_v63 = vsel %vm2083_vm7, %v2062_v35, %v1418_v55 }
 0x131   : > { %v1544_v5 = vpop.permute.xlu1 %1543 }
 0x132   : > { %v1528_v0 = vpop.permute.xlu0 %1527  ;;  %v2142_v20 = vsel %vm2116_vm8, %v2109_v62, %v1544_v5 }
 0x133   : > { %v2126_v61 = vsel %vm2116_vm8, %v2093_v57, %v1528_v0 }
 0x135   : > { %v1546_v15 = vpop.permute.xlu1 %1545 }
 0x136   : > { %v1530_v25 = vpop.permute.xlu0 %1529  ;;  %v2144_v17 = vsel %vm2116_vm8, %v2111_v22, %v1546_v15 }
 0x137   : > { %v2128_v46 = vsel %vm2116_vm8, %v2095_v63, %v1530_v25 }
 0x139   : > { %v1816_v30 = vpop.permute.xlu1 %1815 }
 0x13a   : > { %v1800_v26 = vpop.permute.xlu0 %1799  ;;  %v2175_v3 = vsel %vm2149_vm9, %v2142_v20, %v1816_v30 }
 0x13b   : > { %v2159_v42 = vsel %vm2149_vm9, %v2126_v61, %v1800_v26 }
 0x13d   : > { %v1818_v9 = vpop.permute.xlu1 %1817 }
 0x13e   : > { %v1802_v59 = vpop.permute.xlu0 %1801  ;;  %v2177_v23 = vsel %vm2149_vm9, %v2144_v17, %v1818_v9 }
 0x13f   : > { %v2161_v4 = vsel %vm2149_vm9, %v2128_v46, %v1802_v59 }
 0x141   : > { %v1944_v33 = vpop.permute.xlu1 %1943 }
 0x142   : > { %v2208_v47 = vsel %vm2182_vm10, %v2175_v3, %v1944_v33  ;;  %v1928_v60 = vpop.permute.xlu0 %1927 }
 0x143   : > { %v2192_v14 = vsel %vm2182_vm10, %v2159_v42, %v1928_v60  ;;  %2957 = vmatprep.mubr.msk.bf16.mxu1 %vm2242_vm11, %v2208_v47 }
 0x144   : > { %2941 = vmatprep.mubr.msk.bf16.mxu0 %vm2242_vm11, %v2192_v14 }
 0x145   : > { %v795_v11 = vpop.permute.xlu1 %794 }
 0x146   : > { %v779_v31 = vpop.permute.xlu0 %778  ;;  %v1981_v13 = vsel %vm1951_vm3, %v3948_v49, %v795_v11 }
 0x147   : > { %v1965_v39 = vsel %vm1951_vm3, %v3963_v12, %v779_v31 }
 0x149   : > { %v1946_v29 = vpop.permute.xlu1 %1945 }
 0x14a   : > { %v2210_v1 = vsel %vm2182_vm10, %v2177_v23, %v1946_v29  ;;  %v1930_v45 = vpop.permute.xlu0 %1929 }
 0x14b   : > { %v2194_v7 = vsel %vm2182_vm10, %v2161_v4, %v1930_v45  ;;  %2958 = vmatmul.mubr.msk.bf16.gmra.mxu1 %vm2242_vm11, %v2210_v1  ;;  %v4449_v45 = vld [vmem:[%s4531_s2] ss:$0 sm:$0xff] }
 0x14c   : > { %2942 = vmatmul.mubr.msk.bf16.gmra.mxu0 %vm2242_vm11, %v2194_v7 }
 0x14d   : > { %v797_v37 = vpop.permute.xlu1 %796 }
 0x14e   : > { %v781_v18 = vpop.permute.xlu0 %780  ;;  %v1983_v33 = vsel %vm1951_vm3, %v4029_v44, %v797_v37 }
 0x14f   : > { %v1967_v12 = vsel %vm1951_vm3, %v4036_v40, %v781_v18 }
 0x151   : > { %v924_v21 = vpop.permute.xlu1 %923 }
 0x152   : > { %v908_v27 = vpop.permute.xlu0 %907  ;;  %v2014_v59 = vsel %vm1984_vm4, %v1981_v13, %v924_v21 }
 0x153   : > { %v1998_v41 = vsel %vm1984_vm4, %v1965_v39, %v908_v27 }
 0x155   : > { %v926_v24 = vpop.permute.xlu1 %925 }
 0x156   : > { %v910_v6 = vpop.permute.xlu0 %909  ;;  %v2016_v47 = vsel %vm1984_vm4, %v1983_v33, %v926_v24 }
 0x157   : > { %v2000_v10 = vsel %vm1984_vm4, %v1967_v12, %v910_v6 }
 0x159   : > { %v1036_v48 = vpop.permute.xlu1 %1035 }
 0x15a   : > { %v1020_v52 = vpop.permute.xlu0 %1019  ;;  %v2047_v62 = vsel %vm2017_vm5, %v2014_v59, %v1036_v48 }
 0x15b   : > { %v2031_v20 = vsel %vm2017_vm5, %v1998_v41, %v1020_v52 }
 0x15d   : > { %v1038_v8 = vpop.permute.xlu1 %1037 }
 0x15e   : > { %v1022_v55 = vpop.permute.xlu0 %1021  ;;  %v2049_v14 = vsel %vm2017_vm5, %v2016_v47, %v1038_v8 }
 0x15f   : > { %v2033_v16 = vsel %vm2017_vm5, %v2000_v10, %v1022_v55 }
 0x161   : > { %v1308_v5 = vpop.permute.xlu1 %1307 }
 0x162   : > { %v1292_v0 = vpop.permute.xlu0 %1291  ;;  %v2080_v61 = vsel %vm2050_vm6, %v2047_v62, %v1308_v5 }
 0x163   : > { %v2064_v49 = vsel %vm2050_vm6, %v2031_v20, %v1292_v0 }
 0x165   : > { %v1310_v15 = vpop.permute.xlu1 %1309 }
 0x166   : > { %v1294_v25 = vpop.permute.xlu0 %1293  ;;  %v2082_v36 = vsel %vm2050_vm6, %v2049_v14, %v1310_v15 }
 0x167   : > { %v2066_v58 = vsel %vm2050_vm6, %v2033_v16, %v1294_v25 }
 0x169   : > { %v1436_v30 = vpop.permute.xlu1 %1435 }
 0x16a   : > { %v1420_v26 = vpop.permute.xlu0 %1419  ;;  %v2113_v42 = vsel %vm2083_vm7, %v2080_v61, %v1436_v30 }
 0x16b   : > { %v2097_v60 = vsel %vm2083_vm7, %v2064_v49, %v1420_v26 }
 0x16d   : > { %v1438_v38 = vpop.permute.xlu1 %1437 }
 0x16e   : > { %v1422_v56 = vpop.permute.xlu0 %1421  ;;  %v2115_v28 = vsel %vm2083_vm7, %v2082_v36, %v1438_v38 }
 0x16f   : > { %v2099_v35 = vsel %vm2083_vm7, %v2066_v58, %v1422_v56 }
 0x171   : > { %v1548_v50 = vpop.permute.xlu1 %1547 }
 0x172   : > { %v1532_v32 = vpop.permute.xlu0 %1531  ;;  %v2146_v2 = vsel %vm2116_vm8, %v2113_v42, %v1548_v50 }
 0x173   : > { %v2130_v43 = vsel %vm2116_vm8, %v2097_v60, %v1532_v32 }
 0x175   : > { %v1550_v19 = vpop.permute.xlu1 %1549 }
 0x176   : > { %v1534_v34 = vpop.permute.xlu0 %1533  ;;  %v2148_v22 = vsel %vm2116_vm8, %v2115_v28, %v1550_v19 }
 0x177   : > { %v2132_v63 = vsel %vm2116_vm8, %v2099_v35, %v1534_v34 }
 0x179   : > { %v1820_v53 = vpop.permute.xlu1 %1819 }
 0x17a   : > { %v1804_v9 = vpop.permute.xlu0 %1803  ;;  %v2179_v44 = vsel %vm2149_vm9, %v2146_v2, %v1820_v53 }
 0x17b   : > { %v2163_v40 = vsel %vm2149_vm9, %v2130_v43, %v1804_v9 }
 0x17d   : > { %v1822_v57 = vpop.permute.xlu1 %1821 }
 0x17e   : > { %v1806_v3 = vpop.permute.xlu0 %1805  ;;  %v2181_v17 = vsel %vm2149_vm9, %v2148_v22, %v1822_v57 }
 0x17f   : > { %v2165_v23 = vsel %vm2149_vm9, %v2132_v63, %v1806_v3 }
 0x181   : > { %v1948_v51 = vpop.permute.xlu1 %1947 }
 0x182   : > { %v2212_v54 = vsel %vm2182_vm10, %v2179_v44, %v1948_v51  ;;  %v1932_v11 = vpop.permute.xlu0 %1931 }
 0x183   : > { %v2196_v31 = vsel %vm2182_vm10, %v2163_v40, %v1932_v11  ;;  %2961 = vmatprep.mubr.msk.bf16.mxu1 %vm2242_vm11, %v2212_v54 }
 0x184   : > { %2945 = vmatprep.mubr.msk.bf16.mxu0 %vm2242_vm11, %v2196_v31 }
 0x185   : > { %v1950_v46 = vpop.permute.xlu1 %1949 }
 0x186   : > { %v2214_v29 = vsel %vm2182_vm10, %v2181_v17, %v1950_v46  ;;  %v1934_v4 = vpop.permute.xlu0 %1933 }
 0x187   : > { %v2198_v1 = vsel %vm2182_vm10, %v2165_v23, %v1934_v4  ;;  %2962 = vmatmul.mubr.msk.bf16.gmra.mxu1 %vm2242_vm11, %v2214_v29 }
 0x188   : > { %2946 = vmatmul.mubr.msk.bf16.gmra.mxu0 %vm2242_vm11, %v2198_v1 }
 0x18b   : > { %v2951_v7 = vpop.f32.mrf.mxu1 }
 0x18c   : > { %v2935_v37 = vpop.f32.mrf.mxu0  ;;  %v2386_v18 = vadd.f32 %v2951_v7, %v4449_v45 }
 0x18d   : > { %v2322_v21 = vadd.f32 %v2935_v37, %v4449_v45  ;;  %v2377_v27 = vpop.f32.mrf.mxu1 }
 0x18e   : > { %2458 = vst [vmem:[%s4454_s16 + $0x90] sm:$0xff] %v2386_v18  ;;  %v2313_v24 = vpop.f32.mrf.mxu0  ;;  %v2378_v6 = vadd.f32 %v4449_v45, %v2377_v27 }
 0x18f   : > { %2442 = vst [vmem:[%s4454_s16 + $0x10] sm:$0xff] %v2322_v21  ;;  %v2314_v48 = vadd.f32 %v4449_v45, %v2313_v24  ;;  %v2952_v52 = vpop.f32.mrf.mxu1 }
 0x190   : > { %2456 = vst [vmem:[%s4454_s16 + $0x80] sm:$0xff] %v2378_v6  ;;  %v2936_v8 = vpop.f32.mrf.mxu0  ;;  %v2389_v55 = vadd.f32 %v2952_v52, %v4449_v45 }
 0x191   : > { %2440 = vst [vmem:[%s4454_s16] sm:$0xff] %v2314_v48  ;;  %v2325_v5 = vadd.f32 %v2936_v8, %v4449_v45  ;;  %v2380_v0 = vpop.f32.mrf.mxu1 }
 0x192   : > { %2459 = vst [vmem:[%s4454_s16 + $0x98] sm:$0xff] %v2389_v55  ;;  %v2316_v15 = vpop.f32.mrf.mxu0  ;;  %v2381_v25 = vadd.f32 %v4449_v45, %v2380_v0 }
 0x193   : > { %2443 = vst [vmem:[%s4454_s16 + $0x18] sm:$0xff] %v2325_v5  ;;  %v2317_v30 = vadd.f32 %v4449_v45, %v2316_v15 }
 0x194   : > { %2457 = vst [vmem:[%s4454_s16 + $0x88] sm:$0xff] %v2381_v25 }
 0x195   : > { %2441 = vst [vmem:[%s4454_s16 + $0x8] sm:$0xff] %v2317_v30 }
 0x1cb   : > { %v2955_v26 = vpop.f32.mrf.mxu1 }
 0x1cc   : > { %v2939_v38 = vpop.f32.mrf.mxu0  ;;  %v2402_v56 = vadd.f32 %v2955_v26, %v4449_v45 }
 0x1cd   : > { %v2338_v50 = vadd.f32 %v2939_v38, %v4449_v45  ;;  %v2393_v32 = vpop.f32.mrf.mxu1 }
 0x1ce   : > { %2462 = vst [vmem:[%s4454_s16 + $0xb0] sm:$0xff] %v2402_v56  ;;  %v2329_v19 = vpop.f32.mrf.mxu0  ;;  %v2394_v34 = vadd.f32 %v4449_v45, %v2393_v32 }
 0x1cf   : > { %2446 = vst [vmem:[%s4454_s16 + $0x30] sm:$0xff] %v2338_v50  ;;  %v2330_v53 = vadd.f32 %v4449_v45, %v2329_v19  ;;  %v2956_v9 = vpop.f32.mrf.mxu1 }
 0x1d0   : > { %2460 = vst [vmem:[%s4454_s16 + $0xa0] sm:$0xff] %v2394_v34  ;;  %v2940_v13 = vpop.f32.mrf.mxu0  ;;  %v2405_v39 = vadd.f32 %v2956_v9, %v4449_v45 }
 0x1d1   : > { %2444 = vst [vmem:[%s4454_s16 + $0x20] sm:$0xff] %v2330_v53  ;;  %v2341_v59 = vadd.f32 %v2940_v13, %v4449_v45  ;;  %v2396_v41 = vpop.f32.mrf.mxu1 }
 0x1d2   : > { %2463 = vst [vmem:[%s4454_s16 + $0xb8] sm:$0xff] %v2405_v39  ;;  %v2332_v62 = vpop.f32.mrf.mxu0  ;;  %v2397_v57 = vadd.f32 %v4449_v45, %v2396_v41 }
 0x1d3   : > { %2447 = vst [vmem:[%s4454_s16 + $0x38] sm:$0xff] %v2341_v59  ;;  %v2333_v20 = vadd.f32 %v4449_v45, %v2332_v62 }
 0x1d4   : > { %2461 = vst [vmem:[%s4454_s16 + $0xa8] sm:$0xff] %v2397_v57 }
 0x1d5   : > { %2445 = vst [vmem:[%s4454_s16 + $0x28] sm:$0xff] %v2333_v20 }
 0x20b   : > { %v2959_v61 = vpop.f32.mrf.mxu1 }
 0x20c   : > { %v2943_v3 = vpop.f32.mrf.mxu0  ;;  %v2418_v33 = vadd.f32 %v2959_v61, %v4449_v45 }
 0x20d   : > { %v2354_v49 = vadd.f32 %v2943_v3, %v4449_v45  ;;  %v2409_v42 = vpop.f32.mrf.mxu1 }
 0x20e   : > { %2466 = vst [vmem:[%s4454_s16 + $0xd0] sm:$0xff] %v2418_v33  ;;  %v2345_v12 = vpop.f32.mrf.mxu0  ;;  %v2410_v47 = vadd.f32 %v4449_v45, %v2409_v42 }
 0x20f   : > { %2450 = vst [vmem:[%s4454_s16 + $0x50] sm:$0xff] %v2354_v49  ;;  %v2346_v60 = vadd.f32 %v4449_v45, %v2345_v12  ;;  %v2960_v2 = vpop.f32.mrf.mxu1 }
 0x210   : > { %2464 = vst [vmem:[%s4454_s16 + $0xc0] sm:$0xff] %v2410_v47  ;;  %v2944_v10 = vpop.f32.mrf.mxu0  ;;  %v2421_v14 = vadd.f32 %v2960_v2, %v4449_v45 }
 0x211   : > { %2448 = vst [vmem:[%s4454_s16 + $0x40] sm:$0xff] %v2346_v60  ;;  %v2357_v43 = vadd.f32 %v2944_v10, %v4449_v45  ;;  %v2412_v44 = vpop.f32.mrf.mxu1 }
 0x212   : > { %2467 = vst [vmem:[%s4454_s16 + $0xd8] sm:$0xff] %v2421_v14  ;;  %v2348_v51 = vpop.f32.mrf.mxu0  ;;  %v2413_v16 = vadd.f32 %v4449_v45, %v2412_v44 }
 0x213   : > { %2451 = vst [vmem:[%s4454_s16 + $0x58] sm:$0xff] %v2357_v43  ;;  %v2349_v36 = vadd.f32 %v4449_v45, %v2348_v51 }
 0x214   : > { %2465 = vst [vmem:[%s4454_s16 + $0xc8] sm:$0xff] %v2413_v16 }
 0x215   : > { %2449 = vst [vmem:[%s4454_s16 + $0x48] sm:$0xff] %v2349_v36 }
 0x247   : > { %v2963_v40 = vpop.f32.mrf.mxu1 }
 0x248   : > { %v2947_v54 = vpop.f32.mrf.mxu0  ;;  %v2434_v11 = vadd.f32 %v2963_v40, %v4449_v45 }
 0x249   : > { %v2370_v58 = vadd.f32 %v2947_v54, %v4449_v45  ;;  %v2425_v28 = vpop.f32.mrf.mxu1 }
 0x24a   : > { %2470 = vst [vmem:[%s4454_s16 + $0xf0] sm:$0xff] %v2434_v11  ;;  %v2361_v31 = vpop.f32.mrf.mxu0  ;;  %v2426_v35 = vadd.f32 %v4449_v45, %v2425_v28 }
 0x24b   : > { %2454 = vst [vmem:[%s4454_s16 + $0x70] sm:$0xff] %v2370_v58  ;;  %v2362_v22 = vadd.f32 %v4449_v45, %v2361_v31  ;;  %v2964_v63 = vpop.f32.mrf.mxu1 }
 0x24c   : > { %2468 = vst [vmem:[%s4454_s16 + $0xe0] sm:$0xff] %v2426_v35  ;;  %v2948_v17 = vpop.f32.mrf.mxu0  ;;  %v2437_v46 = vadd.f32 %v2964_v63, %v4449_v45 }
 0x24d   : > { %2452 = vst [vmem:[%s4454_s16 + $0x60] sm:$0xff] %v2362_v22  ;;  %v2373_v23 = vadd.f32 %v2948_v17, %v4449_v45  ;;  %v2428_v29 = vpop.f32.mrf.mxu1 }
 0x24e   : > { %2471 = vst [vmem:[%s4454_s16 + $0xf8] sm:$0xff] %v2437_v46  ;;  %v2364_v4 = vpop.f32.mrf.mxu0  ;;  %v2429_v1 = vadd.f32 %v4449_v45, %v2428_v29 }
 0x24f   : > { %2455 = vst [vmem:[%s4454_s16 + $0x78] sm:$0xff] %v2373_v23  ;;  %v2365_v7 = vadd.f32 %v4449_v45, %v2364_v4 }
 0x250   : > { %2469 = vst [vmem:[%s4454_s16 + $0xe8] sm:$0xff] %v2429_v1 }
 0x251   : > { %2453 = vst [vmem:[%s4454_s16 + $0x68] sm:$0xff] %v2365_v7 }
 0x252 PF: > { %s13_s14 = sadd.s32 1, %s3175_s14   ;;  %s4548_s12 = smov %s3171_s13 }
 0x253   : > { %p10_p5 = scmp.ge.s32.totalorder %s13_s14, 4   ;;  %s4549_s13 = smov %s4551_s15 }
 0x255   :  { %12 = sbr.rel (!%p10_p5) target bundleno = 2 (0x2), region = 71 }

</bundles_post_ra>
